<compile_context>
chip_gen: v5e
topology: v5e:2x2
jax: 0.10.0
libtpu: 0.0.40
codegen_flags: <defaults>
</compile_context>

<pallas_src>
import functools

import jax
import jax.numpy as jnp
from jax.experimental import pallas as pl
from jax.experimental.pallas import tpu as pltpu


def _decoder_block_kernel(heads, head_dim, embed,
                          q_ref, k_ref, v_ref, mask_ref,
                          wqkv_ref, bqkv_ref, wo_s_ref, bo_s_ref,
                          g0_ref, b0_ref,
                          wq_c_ref, bq_c_ref, wk_c_ref, bk_c_ref,
                          wv_c_ref, bv_c_ref, wo_c_ref, bo_c_ref,
                          g1_ref, be1_ref,
                          w1_ref, bf1_ref, w2_ref, bf2_ref,
                          g2_ref, be2_ref,
                          o_ref):
    E = embed
    x = q_ref[0].astype(jnp.float32)        # (Sq, E)  decoder input (query)
    k_in = k_ref[0].astype(jnp.float32)     # (Sk, E)  encoder output (key)
    v_in = v_ref[0].astype(jnp.float32)     # (Sk, E)  encoder output (value)

    def linear(inp, w_ref, b_ref):
        return jnp.dot(inp, w_ref[...], preferred_element_type=jnp.float32) + b_ref[...]

    def split_heads(t):
        # (L, E) -> (H, L, Dh): lane slices + leading-axis stack (minor dims preserved).
        return jnp.stack(
            [t[:, h * head_dim:(h + 1) * head_dim] for h in range(heads)], axis=0)

    def merge_heads(t):
        # (H, L, Dh) -> (L, E) in head-major column order (matches torch .reshape()).
        return jnp.concatenate([t[h] for h in range(heads)], axis=-1)

    def mha(q, k, v, mask):
        # q already carries the 1/sqrt(embedSize) scale (folded into its projection).
        qh, kh, vh = split_heads(q), split_heads(k), split_heads(v)      # (H, L, Dh)
        energy = jnp.einsum('hqd,hkd->hqk', qh, kh,
                            preferred_element_type=jnp.float32)          # (H, Lq, Lk)
        if mask is not None:
            energy = jnp.where(mask[None, :, :] == 0.0, jnp.float32(-1e20), energy)
        m = jnp.max(energy, axis=-1, keepdims=True)
        p = jnp.exp(energy - m)
        att = p / jnp.sum(p, axis=-1, keepdims=True)                     # batched softmax
        ctx = jnp.einsum('hqk,hkd->hqd', att, vh,
                         preferred_element_type=jnp.float32)             # (H, Lq, Dh)
        return merge_heads(ctx)

    def layernorm(t, g_ref, b_ref):
        mu = jnp.mean(t, axis=-1, keepdims=True)
        var = jnp.mean((t - mu) ** 2, axis=-1, keepdims=True)
        return (t - mu) * jax.lax.rsqrt(var + 1e-5) * g_ref[...] + b_ref[...]

    # --- masked self-attention: attention(query, query, query, trgMask) ---
    qkv = linear(x, wqkv_ref, bqkv_ref)                       # (Sq, 3E) fused QKV
    a = mha(qkv[:, :E], qkv[:, E:2 * E], qkv[:, 2 * E:], mask_ref[...])
    a = linear(a, wo_s_ref, bo_s_ref)
    y = layernorm(a + x, g0_ref, b0_ref)                      # DecoderBlock.norm (+dropout=id)

    # --- TransformerBlock: cross-attention(y, key, value, None) ---
    b = mha(linear(y, wq_c_ref, bq_c_ref),                    # q (scale folded)
            linear(k_in, wk_c_ref, bk_c_ref),                 # k
            linear(v_in, wv_c_ref, bv_c_ref),                 # v
            None)
    b = linear(b, wo_c_ref, bo_c_ref)
    z = layernorm(b + y, g1_ref, be1_ref)                     # TransformerBlock.norm1

    # --- feed forward: Linear -> LeakyReLU(0.05) -> Linear ---
    h = linear(z, w1_ref, bf1_ref)
    h = jnp.where(h > 0, h, 0.05 * h)
    f = linear(h, w2_ref, bf2_ref)

    out = layernorm(f + z, g2_ref, be2_ref)                   # norm2 (+dropout=id)
    # TODO(synk): nn.Dropout is stochastic in train mode; implemented as identity (eval).
    # NOTE: at E=32/S=8 the output tile is ~1 KiB; a lane-dense (1, S*E) store slab would
    # require an in-kernel sublane->lane relayout costing more than the masked store it
    # saves, so the natural (1, S, E) layout is kept at these toy shapes.
    o_ref[0] = out.astype(o_ref.dtype)


def decoder_block(query, key, value, trg_mask, p, heads, head_dim):
    """Full DecoderBlock forward in one pallas_call; grid over batch, marked "parallel"."""
    N, Sq, E = query.shape
    _, Sk, _ = key.shape
    scale = 1.0 / (float(E) ** 0.5)     # softmax(energy / sqrt(embedSize))

    # Fuse self-attn Q/K/V into one (E, 3E) weight; fold the softmax scale into the
    # query columns and bias (exact, done once at trace time in the wrapper).
    w_qkv = jnp.concatenate([p["wq_s"] * scale, p["wk_s"], p["wv_s"]], axis=1)
    b_qkv = jnp.concatenate([p["bq_s"] * scale, p["bk_s"], p["bv_s"]], axis=1)
    wq_c = p["wq_c"] * scale
    bq_c = p["bq_c"] * scale

    weights = [w_qkv, b_qkv, p["wo_s"], p["bo_s"],
               p["g0"], p["b0"],
               wq_c, bq_c, p["wk_c"], p["bk_c"], p["wv_c"], p["bv_c"],
               p["wo_c"], p["bo_c"],
               p["g1"], p["be1"],
               p["w1"], p["bf1"], p["w2"], p["bf2"],
               p["g2"], p["be2"]]

    in_specs = [
        pl.BlockSpec((1, Sq, E), lambda n: (n, 0, 0)),     # query (decoder input)
        pl.BlockSpec((1, Sk, E), lambda n: (n, 0, 0)),     # key   (encoder output)
        pl.BlockSpec((1, Sk, E), lambda n: (n, 0, 0)),     # value (encoder output)
        pl.BlockSpec((Sq, Sq), lambda n: (0, 0)),          # trgMask (constant across grid)
    ]
    # Weights/biases: constant index_map -> DMA'd once, never re-fetched across grid steps.
    for w in weights:
        in_specs.append(pl.BlockSpec(w.shape, lambda n: (0, 0)))

    kernel = functools.partial(_decoder_block_kernel, heads, head_dim, E)
    return pl.pallas_call(
        kernel,
        out_shape=jax.ShapeDtypeStruct((N, Sq, E), query.dtype),
        grid=(N,),
        in_specs=in_specs,
        out_specs=pl.BlockSpec((1, Sq, E), lambda n: (n, 0, 0)),
        compiler_params=pltpu.CompilerParams(dimension_semantics=("parallel",)),
    )(query, key, value, trg_mask, *weights)


# ----------------------------- reference (plain JAX, mirrors PyTorch) -----------------------------
def _mha_ref(q_in, k_in, v_in, mask, wq, bq, wk, bk, wv, bv, wo, bo, heads, head_dim, embed):
    N, Lq, E = q_in.shape
    Lk = k_in.shape[1]
    q = (q_in @ wq + bq[0]).reshape(N, Lq, heads, head_dim)
    k = (k_in @ wk + bk[0]).reshape(N, Lk, heads, head_dim)
    v = (v_in @ wv + bv[0]).reshape(N, Lk, heads, head_dim)
    energy = jnp.einsum("nqhd,nkhd->nhqk", q, k)
    if mask is not None:
        energy = jnp.where(mask[None, None] == 0, jnp.float32(-1e20), energy)
    att = jax.nn.softmax(energy / jnp.sqrt(jnp.float32(embed)), axis=3)
    out = jnp.einsum("nhqk,nkhd->nqhd", att, v).reshape(N, Lq, E)
    return out @ wo + bo[0]


def _decoder_block_ref(query, key, value, mask, p, heads, head_dim, embed):
    def ln(t, g, b):
        mu = t.mean(-1, keepdims=True)
        var = ((t - mu) ** 2).mean(-1, keepdims=True)
        return (t - mu) / jnp.sqrt(var + 1e-5) * g[0] + b[0]

    a = _mha_ref(query, query, query, mask,
                 p["wq_s"], p["bq_s"], p["wk_s"], p["bk_s"], p["wv_s"], p["bv_s"],
                 p["wo_s"], p["bo_s"], heads, head_dim, embed)
    y = ln(a + query, p["g0"], p["b0"])
    b2 = _mha_ref(y, key, value, None,
                  p["wq_c"], p["bq_c"], p["wk_c"], p["bk_c"], p["wv_c"], p["bv_c"],
                  p["wo_c"], p["bo_c"], heads, head_dim, embed)
    z = ln(b2 + y, p["g1"], p["be1"])
    h = z @ p["w1"] + p["bf1"][0]
    h = jnp.where(h > 0, h, 0.05 * h)
    f = h @ p["w2"] + p["bf2"][0]
    return ln(f + z, p["g2"], p["be2"])


# ----------------------------- param init -----------------------------
def _init_linear(key, din, dout):
    k1, k2 = jax.random.split(key)
    w = jax.random.normal(k1, (din, dout), jnp.float32) * (1.0 / float(din) ** 0.5)
    b = jax.random.normal(k2, (1, dout), jnp.float32) * 0.01
    return w, b


if __name__ == "__main__":
    # transformerInfo (small, deterministic):
    EMBED = 32        # embedSize
    HEADS = 4         # heads
    HEAD_DIM = 8      # headDim = embedSize // heads
    FWD = 2           # forwardExpansion
    N, SQ, SK = 2, 8, 16   # batch, decoder (target) seq len, encoder (source) seq len

    key = jax.random.PRNGKey(0)
    kq, kk, kv, kw = jax.random.split(key, 4)

    query = jax.random.normal(kq, (N, SQ, EMBED), jnp.float32)      # embedded decoder input
    enc_k = jax.random.normal(kk, (N, SK, EMBED), jnp.float32)      # encoder output (key)
    enc_v = jax.random.normal(kv, (N, SK, EMBED), jnp.float32)      # encoder output (value)
    trg_mask = jnp.tril(jnp.ones((SQ, SQ), jnp.float32))            # causal trgMask

    ks = jax.random.split(kw, 16)
    wq_s, bq_s = _init_linear(ks[0], EMBED, EMBED)
    wk_s, bk_s = _init_linear(ks[1], EMBED, EMBED)
    wv_s, bv_s = _init_linear(ks[2], EMBED, EMBED)
    wo_s, bo_s = _init_linear(ks[3], EMBED, EMBED)
    wq_c, bq_c = _init_linear(ks[4], EMBED, EMBED)
    wk_c, bk_c = _init_linear(ks[5], EMBED, EMBED)
    wv_c, bv_c = _init_linear(ks[6], EMBED, EMBED)
    wo_c, bo_c = _init_linear(ks[7], EMBED, EMBED)
    w1, bf1 = _init_linear(ks[8], EMBED, FWD * EMBED)
    w2, bf2 = _init_linear(ks[9], FWD * EMBED, EMBED)

    p = dict(
        wq_s=wq_s, bq_s=bq_s, wk_s=wk_s, bk_s=bk_s, wv_s=wv_s, bv_s=bv_s,
        wo_s=wo_s, bo_s=bo_s,
        g0=1.0 + 0.1 * jax.random.normal(ks[10], (1, EMBED), jnp.float32),
        b0=0.1 * jax.random.normal(ks[11], (1, EMBED), jnp.float32),
        wq_c=wq_c, bq_c=bq_c, wk_c=wk_c, bk_c=bk_c, wv_c=wv_c, bv_c=bv_c,
        wo_c=wo_c, bo_c=bo_c,
        g1=1.0 + 0.1 * jax.random.normal(ks[12], (1, EMBED), jnp.float32),
        be1=0.1 * jax.random.normal(ks[13], (1, EMBED), jnp.float32),
        w1=w1, bf1=bf1, w2=w2, bf2=bf2,
        g2=1.0 + 0.1 * jax.random.normal(ks[14], (1, EMBED), jnp.float32),
        be2=0.1 * jax.random.normal(ks[15], (1, EMBED), jnp.float32),
    )

    out = decoder_block(query, enc_k, enc_v, trg_mask, p, HEADS, HEAD_DIM)
    out = jax.block_until_ready(out)

    ref = _decoder_block_ref(query, enc_k, enc_v, trg_mask, p, HEADS, HEAD_DIM, EMBED)
    assert out.shape == (N, SQ, EMBED)
    assert jnp.allclose(out, ref, rtol=1e-4, atol=1e-4), "mismatch vs JAX reference"

    print("KERNEL_OK")
</pallas_src>

<mosaic_0001>
module attributes {stable_mosaic.version = 11 : i64} {
  func.func @_decoder_block_kernel(%arg0: i32, %arg1: memref<1x8x32xf32, #tpu.memory_space<vmem>>, %arg2: memref<1x16x32xf32, #tpu.memory_space<vmem>>, %arg3: memref<1x16x32xf32, #tpu.memory_space<vmem>>, %arg4: memref<8x8xf32, #tpu.memory_space<vmem>>, %arg5: memref<32x96xf32, #tpu.memory_space<vmem>>, %arg6: memref<1x96xf32, #tpu.memory_space<vmem>>, %arg7: memref<32x32xf32, #tpu.memory_space<vmem>>, %arg8: memref<1x32xf32, #tpu.memory_space<vmem>>, %arg9: memref<1x32xf32, #tpu.memory_space<vmem>>, %arg10: memref<1x32xf32, #tpu.memory_space<vmem>>, %arg11: memref<32x32xf32, #tpu.memory_space<vmem>>, %arg12: memref<1x32xf32, #tpu.memory_space<vmem>>, %arg13: memref<32x32xf32, #tpu.memory_space<vmem>>, %arg14: memref<1x32xf32, #tpu.memory_space<vmem>>, %arg15: memref<32x32xf32, #tpu.memory_space<vmem>>, %arg16: memref<1x32xf32, #tpu.memory_space<vmem>>, %arg17: memref<32x32xf32, #tpu.memory_space<vmem>>, %arg18: memref<1x32xf32, #tpu.memory_space<vmem>>, %arg19: memref<1x32xf32, #tpu.memory_space<vmem>>, %arg20: memref<1x32xf32, #tpu.memory_space<vmem>>, %arg21: memref<32x64xf32, #tpu.memory_space<vmem>>, %arg22: memref<1x64xf32, #tpu.memory_space<vmem>>, %arg23: memref<64x32xf32, #tpu.memory_space<vmem>>, %arg24: memref<1x32xf32, #tpu.memory_space<vmem>>, %arg25: memref<1x32xf32, #tpu.memory_space<vmem>>, %arg26: memref<1x32xf32, #tpu.memory_space<vmem>>, %arg27: memref<1x8x32xf32, #tpu.memory_space<vmem>>) attributes {dimension_semantics = [#tpu.dimension_semantics<parallel>], iteration_bounds = array<i64: 2>, scalar_prefetch = 0 : i64, scratch_operands = 0 : i64, tpu.core_type = #tpu.core_type<tc>, window_params = [{transform_indices = @transform_0, window_bounds = array<i64: 1, 8, 32>}, {transform_indices = @transform_1, window_bounds = array<i64: 1, 16, 32>}, {transform_indices = @transform_2, window_bounds = array<i64: 1, 16, 32>}, {pipeline_mode = #tpu.pipeline_mode<synchronous>, transform_indices = @transform_3, window_bounds = array<i64: 8, 8>}, {pipeline_mode = #tpu.pipeline_mode<synchronous>, transform_indices = @transform_4, window_bounds = array<i64: 32, 96>}, {pipeline_mode = #tpu.pipeline_mode<synchronous>, transform_indices = @transform_5, window_bounds = array<i64: 1, 96>}, {pipeline_mode = #tpu.pipeline_mode<synchronous>, transform_indices = @transform_6, window_bounds = array<i64: 32, 32>}, {pipeline_mode = #tpu.pipeline_mode<synchronous>, transform_indices = @transform_7, window_bounds = array<i64: 1, 32>}, {pipeline_mode = #tpu.pipeline_mode<synchronous>, transform_indices = @transform_8, window_bounds = array<i64: 1, 32>}, {pipeline_mode = #tpu.pipeline_mode<synchronous>, transform_indices = @transform_9, window_bounds = array<i64: 1, 32>}, {pipeline_mode = #tpu.pipeline_mode<synchronous>, transform_indices = @transform_10, window_bounds = array<i64: 32, 32>}, {pipeline_mode = #tpu.pipeline_mode<synchronous>, transform_indices = @transform_11, window_bounds = array<i64: 1, 32>}, {pipeline_mode = #tpu.pipeline_mode<synchronous>, transform_indices = @transform_12, window_bounds = array<i64: 32, 32>}, {pipeline_mode = #tpu.pipeline_mode<synchronous>, transform_indices = @transform_13, window_bounds = array<i64: 1, 32>}, {pipeline_mode = #tpu.pipeline_mode<synchronous>, transform_indices = @transform_14, window_bounds = array<i64: 32, 32>}, {pipeline_mode = #tpu.pipeline_mode<synchronous>, transform_indices = @transform_15, window_bounds = array<i64: 1, 32>}, {pipeline_mode = #tpu.pipeline_mode<synchronous>, transform_indices = @transform_16, window_bounds = array<i64: 32, 32>}, {pipeline_mode = #tpu.pipeline_mode<synchronous>, transform_indices = @transform_17, window_bounds = array<i64: 1, 32>}, {pipeline_mode = #tpu.pipeline_mode<synchronous>, transform_indices = @transform_18, window_bounds = array<i64: 1, 32>}, {pipeline_mode = #tpu.pipeline_mode<synchronous>, transform_indices = @transform_19, window_bounds = array<i64: 1, 32>}, {pipeline_mode = #tpu.pipeline_mode<synchronous>, transform_indices = @transform_20, window_bounds = array<i64: 32, 64>}, {pipeline_mode = #tpu.pipeline_mode<synchronous>, transform_indices = @transform_21, window_bounds = array<i64: 1, 64>}, {pipeline_mode = #tpu.pipeline_mode<synchronous>, transform_indices = @transform_22, window_bounds = array<i64: 64, 32>}, {pipeline_mode = #tpu.pipeline_mode<synchronous>, transform_indices = @transform_23, window_bounds = array<i64: 1, 32>}, {pipeline_mode = #tpu.pipeline_mode<synchronous>, transform_indices = @transform_24, window_bounds = array<i64: 1, 32>}, {pipeline_mode = #tpu.pipeline_mode<synchronous>, transform_indices = @transform_25, window_bounds = array<i64: 1, 32>}, {transform_indices = @transform_26, window_bounds = array<i64: 1, 8, 32>}]} {
    %c0 = arith.constant 0 : index
    %c0_0 = arith.constant 0 : index
    %c0_1 = arith.constant 0 : index
    %0 = vector.load %arg1[%c0, %c0_0, %c0_1] : memref<1x8x32xf32, #tpu.memory_space<vmem>>, vector<1x8x32xf32>
    %1 = vector.shape_cast %0 : vector<1x8x32xf32> to vector<8x32xf32>
    %c0_2 = arith.constant 0 : index
    %c0_3 = arith.constant 0 : index
    %c0_4 = arith.constant 0 : index
    %2 = vector.load %arg2[%c0_2, %c0_3, %c0_4] : memref<1x16x32xf32, #tpu.memory_space<vmem>>, vector<1x16x32xf32>
    %3 = vector.shape_cast %2 : vector<1x16x32xf32> to vector<16x32xf32>
    %c0_5 = arith.constant 0 : index
    %c0_6 = arith.constant 0 : index
    %c0_7 = arith.constant 0 : index
    %4 = vector.load %arg3[%c0_5, %c0_6, %c0_7] : memref<1x16x32xf32, #tpu.memory_space<vmem>>, vector<1x16x32xf32>
    %5 = vector.shape_cast %4 : vector<1x16x32xf32> to vector<16x32xf32>
    %c0_8 = arith.constant 0 : index
    %c0_9 = arith.constant 0 : index
    %6 = vector.load %arg5[%c0_8, %c0_9] : memref<32x96xf32, #tpu.memory_space<vmem>>, vector<32x96xf32>
    %cst = arith.constant dense<0.000000e+00> : vector<8x96xf32>
    %7 = tpu.matmul %1, %6, %cst {dimension_numbers = #tpu.dot_dimension_numbers<[1], [0], [0], [1], [0, 0, 1, 1], [], []>} : vector<8x32xf32>, vector<32x96xf32>, vector<8x96xf32> -> vector<8x96xf32>
    %c0_10 = arith.constant 0 : index
    %c0_11 = arith.constant 0 : index
    %8 = vector.load %arg6[%c0_10, %c0_11] : memref<1x96xf32, #tpu.memory_space<vmem>>, vector<1x96xf32>
    %9 = vector.broadcast %8 : vector<1x96xf32> to vector<8x96xf32>
    %10 = arith.addf %7, %9 : vector<8x96xf32>
    %11 = vector.extract_strided_slice %10 {offsets = [0, 0], sizes = [8, 32], strides = [1, 1]} : vector<8x96xf32> to vector<8x32xf32>
    %12 = vector.extract_strided_slice %10 {offsets = [0, 32], sizes = [8, 32], strides = [1, 1]} : vector<8x96xf32> to vector<8x32xf32>
    %13 = vector.extract_strided_slice %10 {offsets = [0, 64], sizes = [8, 32], strides = [1, 1]} : vector<8x96xf32> to vector<8x32xf32>
    %c0_12 = arith.constant 0 : index
    %c0_13 = arith.constant 0 : index
    %14 = vector.load %arg4[%c0_12, %c0_13] : memref<8x8xf32, #tpu.memory_space<vmem>>, vector<8x8xf32>
    %15 = vector.extract_strided_slice %11 {offsets = [0, 0], sizes = [8, 8], strides = [1, 1]} : vector<8x32xf32> to vector<8x8xf32>
    %16 = vector.extract_strided_slice %11 {offsets = [0, 8], sizes = [8, 8], strides = [1, 1]} : vector<8x32xf32> to vector<8x8xf32>
    %17 = vector.extract_strided_slice %11 {offsets = [0, 16], sizes = [8, 8], strides = [1, 1]} : vector<8x32xf32> to vector<8x8xf32>
    %18 = vector.extract_strided_slice %11 {offsets = [0, 24], sizes = [8, 8], strides = [1, 1]} : vector<8x32xf32> to vector<8x8xf32>
    %19 = vector.shape_cast %15 : vector<8x8xf32> to vector<1x8x8xf32>
    %20 = vector.shape_cast %16 : vector<8x8xf32> to vector<1x8x8xf32>
    %21 = vector.shape_cast %17 : vector<8x8xf32> to vector<1x8x8xf32>
    %22 = vector.shape_cast %18 : vector<8x8xf32> to vector<1x8x8xf32>
    %23 = tpu.concatenate %19, %20, %21, %22 in 0 : vector<1x8x8xf32>, vector<1x8x8xf32>, vector<1x8x8xf32>, vector<1x8x8xf32> -> vector<4x8x8xf32>
    %24 = vector.extract_strided_slice %12 {offsets = [0, 0], sizes = [8, 8], strides = [1, 1]} : vector<8x32xf32> to vector<8x8xf32>
    %25 = vector.extract_strided_slice %12 {offsets = [0, 8], sizes = [8, 8], strides = [1, 1]} : vector<8x32xf32> to vector<8x8xf32>
    %26 = vector.extract_strided_slice %12 {offsets = [0, 16], sizes = [8, 8], strides = [1, 1]} : vector<8x32xf32> to vector<8x8xf32>
    %27 = vector.extract_strided_slice %12 {offsets = [0, 24], sizes = [8, 8], strides = [1, 1]} : vector<8x32xf32> to vector<8x8xf32>
    %28 = vector.shape_cast %24 : vector<8x8xf32> to vector<1x8x8xf32>
    %29 = vector.shape_cast %25 : vector<8x8xf32> to vector<1x8x8xf32>
    %30 = vector.shape_cast %26 : vector<8x8xf32> to vector<1x8x8xf32>
    %31 = vector.shape_cast %27 : vector<8x8xf32> to vector<1x8x8xf32>
    %32 = tpu.concatenate %28, %29, %30, %31 in 0 : vector<1x8x8xf32>, vector<1x8x8xf32>, vector<1x8x8xf32>, vector<1x8x8xf32> -> vector<4x8x8xf32>
    %33 = vector.extract_strided_slice %13 {offsets = [0, 0], sizes = [8, 8], strides = [1, 1]} : vector<8x32xf32> to vector<8x8xf32>
    %34 = vector.extract_strided_slice %13 {offsets = [0, 8], sizes = [8, 8], strides = [1, 1]} : vector<8x32xf32> to vector<8x8xf32>
    %35 = vector.extract_strided_slice %13 {offsets = [0, 16], sizes = [8, 8], strides = [1, 1]} : vector<8x32xf32> to vector<8x8xf32>
    %36 = vector.extract_strided_slice %13 {offsets = [0, 24], sizes = [8, 8], strides = [1, 1]} : vector<8x32xf32> to vector<8x8xf32>
    %37 = vector.shape_cast %33 : vector<8x8xf32> to vector<1x8x8xf32>
    %38 = vector.shape_cast %34 : vector<8x8xf32> to vector<1x8x8xf32>
    %39 = vector.shape_cast %35 : vector<8x8xf32> to vector<1x8x8xf32>
    %40 = vector.shape_cast %36 : vector<8x8xf32> to vector<1x8x8xf32>
    %41 = tpu.concatenate %37, %38, %39, %40 in 0 : vector<1x8x8xf32>, vector<1x8x8xf32>, vector<1x8x8xf32>, vector<1x8x8xf32> -> vector<4x8x8xf32>
    "tpu.trace_start"() <{level = 10 : i32, message = "hqd,hkd->hqk"}> : () -> ()
    %cst_14 = arith.constant dense<0.000000e+00> : vector<4x8x8xf32>
    %42 = tpu.matmul %23, %32, %cst_14 {dimension_numbers = #tpu.dot_dimension_numbers<[2], [2], [1], [1], [0, 0, 0, 1, 1, 1], [0], [0]>} : vector<4x8x8xf32>, vector<4x8x8xf32>, vector<4x8x8xf32> -> vector<4x8x8xf32>
    "tpu.trace_stop"() : () -> ()
    %43 = vector.shape_cast %14 : vector<8x8xf32> to vector<1x8x8xf32>
    %cst_15 = arith.constant 0.000000e+00 : f32
    %44 = vector.broadcast %cst_15 : f32 to vector<1x8x8xf32>
    %45 = arith.cmpf oeq, %43, %44 : vector<1x8x8xf32>
    %cst_16 = arith.constant -1.000000e+20 : f32
    %46 = vector.shape_cast %45 : vector<1x8x8xi1> to vector<1x8x8xi1>
    %47 = vector.broadcast %46 : vector<1x8x8xi1> to vector<4x8x8xi1>
    %48 = vector.broadcast %cst_16 : f32 to vector<4x8x8xf32>
    %49 = arith.select %47, %48, %42 : vector<4x8x8xi1>, vector<4x8x8xf32>
    %cst_17 = arith.constant dense<0xFF800000> : vector<4x8xf32>
    %50 = vector.multi_reduction <maximumf>, %49, %cst_17 [2] : vector<4x8x8xf32> to vector<4x8xf32>
    %51 = vector.shape_cast %50 : vector<4x8xf32> to vector<4x8x1xf32>
    %52 = vector.broadcast %51 : vector<4x8x1xf32> to vector<4x8x8xf32>
    %53 = arith.subf %49, %52 : vector<4x8x8xf32>
    %54 = math.exp %53 : vector<4x8x8xf32>
    %cst_18 = arith.constant dense<0.000000e+00> : vector<4x8xf32>
    %55 = vector.multi_reduction <add>, %54, %cst_18 [2] : vector<4x8x8xf32> to vector<4x8xf32>
    %56 = vector.shape_cast %55 : vector<4x8xf32> to vector<4x8x1xf32>
    %57 = vector.broadcast %56 : vector<4x8x1xf32> to vector<4x8x8xf32>
    %58 = arith.divf %54, %57 : vector<4x8x8xf32>
    "tpu.trace_start"() <{level = 10 : i32, message = "hqk,hkd->hqd"}> : () -> ()
    %cst_19 = arith.constant dense<0.000000e+00> : vector<4x8x8xf32>
    %59 = tpu.matmul %58, %41, %cst_19 {dimension_numbers = #tpu.dot_dimension_numbers<[2], [1], [1], [2], [0, 0, 0, 1, 1, 2], [0], [0]>} : vector<4x8x8xf32>, vector<4x8x8xf32>, vector<4x8x8xf32> -> vector<4x8x8xf32>
    "tpu.trace_stop"() : () -> ()
    %60 = vector.extract_strided_slice %59 {offsets = [0, 0, 0], sizes = [1, 8, 8], strides = [1, 1, 1]} : vector<4x8x8xf32> to vector<1x8x8xf32>
    %61 = vector.shape_cast %60 : vector<1x8x8xf32> to vector<8x8xf32>
    %62 = vector.extract_strided_slice %59 {offsets = [1, 0, 0], sizes = [1, 8, 8], strides = [1, 1, 1]} : vector<4x8x8xf32> to vector<1x8x8xf32>
    %63 = vector.shape_cast %62 : vector<1x8x8xf32> to vector<8x8xf32>
    %64 = vector.extract_strided_slice %59 {offsets = [2, 0, 0], sizes = [1, 8, 8], strides = [1, 1, 1]} : vector<4x8x8xf32> to vector<1x8x8xf32>
    %65 = vector.shape_cast %64 : vector<1x8x8xf32> to vector<8x8xf32>
    %66 = vector.extract_strided_slice %59 {offsets = [3, 0, 0], sizes = [1, 8, 8], strides = [1, 1, 1]} : vector<4x8x8xf32> to vector<1x8x8xf32>
    %67 = vector.shape_cast %66 : vector<1x8x8xf32> to vector<8x8xf32>
    %68 = tpu.concatenate %61, %63, %65, %67 in 1 : vector<8x8xf32>, vector<8x8xf32>, vector<8x8xf32>, vector<8x8xf32> -> vector<8x32xf32>
    %c0_20 = arith.constant 0 : index
    %c0_21 = arith.constant 0 : index
    %69 = vector.load %arg7[%c0_20, %c0_21] : memref<32x32xf32, #tpu.memory_space<vmem>>, vector<32x32xf32>
    %cst_22 = arith.constant dense<0.000000e+00> : vector<8x32xf32>
    %70 = tpu.matmul %68, %69, %cst_22 {dimension_numbers = #tpu.dot_dimension_numbers<[1], [0], [0], [1], [0, 0, 1, 1], [], []>} : vector<8x32xf32>, vector<32x32xf32>, vector<8x32xf32> -> vector<8x32xf32>
    %c0_23 = arith.constant 0 : index
    %c0_24 = arith.constant 0 : index
    %71 = vector.load %arg8[%c0_23, %c0_24] : memref<1x32xf32, #tpu.memory_space<vmem>>, vector<1x32xf32>
    %72 = vector.broadcast %71 : vector<1x32xf32> to vector<8x32xf32>
    %73 = arith.addf %70, %72 : vector<8x32xf32>
    %74 = arith.addf %73, %1 : vector<8x32xf32>
    %cst_25 = arith.constant dense<0.000000e+00> : vector<8xf32>
    %75 = vector.multi_reduction <add>, %74, %cst_25 [1] : vector<8x32xf32> to vector<8xf32>
    %76 = vector.shape_cast %75 : vector<8xf32> to vector<8x1xf32>
    %cst_26 = arith.constant 3.200000e+01 : f32
    %77 = vector.broadcast %cst_26 : f32 to vector<8x1xf32>
    %78 = arith.divf %76, %77 : vector<8x1xf32>
    %79 = vector.broadcast %78 : vector<8x1xf32> to vector<8x32xf32>
    %80 = arith.subf %74, %79 : vector<8x32xf32>
    %81 = arith.mulf %80, %80 : vector<8x32xf32>
    %cst_27 = arith.constant dense<0.000000e+00> : vector<8xf32>
    %82 = vector.multi_reduction <add>, %81, %cst_27 [1] : vector<8x32xf32> to vector<8xf32>
    %83 = vector.shape_cast %82 : vector<8xf32> to vector<8x1xf32>
    %cst_28 = arith.constant 3.200000e+01 : f32
    %84 = vector.broadcast %cst_28 : f32 to vector<8x1xf32>
    %85 = arith.divf %83, %84 : vector<8x1xf32>
    %86 = vector.broadcast %78 : vector<8x1xf32> to vector<8x32xf32>
    %87 = arith.subf %74, %86 : vector<8x32xf32>
    %cst_29 = arith.constant 9.99999974E-6 : f32
    %88 = vector.broadcast %cst_29 : f32 to vector<8x1xf32>
    %89 = arith.addf %85, %88 : vector<8x1xf32>
    %90 = math.rsqrt %89 : vector<8x1xf32>
    %91 = vector.broadcast %90 : vector<8x1xf32> to vector<8x32xf32>
    %92 = arith.mulf %87, %91 : vector<8x32xf32>
    %c0_30 = arith.constant 0 : index
    %c0_31 = arith.constant 0 : index
    %93 = vector.load %arg9[%c0_30, %c0_31] : memref<1x32xf32, #tpu.memory_space<vmem>>, vector<1x32xf32>
    %94 = vector.broadcast %93 : vector<1x32xf32> to vector<8x32xf32>
    %95 = arith.mulf %92, %94 : vector<8x32xf32>
    %c0_32 = arith.constant 0 : index
    %c0_33 = arith.constant 0 : index
    %96 = vector.load %arg10[%c0_32, %c0_33] : memref<1x32xf32, #tpu.memory_space<vmem>>, vector<1x32xf32>
    %97 = vector.broadcast %96 : vector<1x32xf32> to vector<8x32xf32>
    %98 = arith.addf %95, %97 : vector<8x32xf32>
    %c0_34 = arith.constant 0 : index
    %c0_35 = arith.constant 0 : index
    %99 = vector.load %arg11[%c0_34, %c0_35] : memref<32x32xf32, #tpu.memory_space<vmem>>, vector<32x32xf32>
    %cst_36 = arith.constant dense<0.000000e+00> : vector<8x32xf32>
    %100 = tpu.matmul %98, %99, %cst_36 {dimension_numbers = #tpu.dot_dimension_numbers<[1], [0], [0], [1], [0, 0, 1, 1], [], []>} : vector<8x32xf32>, vector<32x32xf32>, vector<8x32xf32> -> vector<8x32xf32>
    %c0_37 = arith.constant 0 : index
    %c0_38 = arith.constant 0 : index
    %101 = vector.load %arg12[%c0_37, %c0_38] : memref<1x32xf32, #tpu.memory_space<vmem>>, vector<1x32xf32>
    %102 = vector.broadcast %101 : vector<1x32xf32> to vector<8x32xf32>
    %103 = arith.addf %100, %102 : vector<8x32xf32>
    %c0_39 = arith.constant 0 : index
    %c0_40 = arith.constant 0 : index
    %104 = vector.load %arg13[%c0_39, %c0_40] : memref<32x32xf32, #tpu.memory_space<vmem>>, vector<32x32xf32>
    %cst_41 = arith.constant dense<0.000000e+00> : vector<16x32xf32>
    %105 = tpu.matmul %3, %104, %cst_41 {dimension_numbers = #tpu.dot_dimension_numbers<[1], [0], [0], [1], [0, 0, 1, 1], [], []>} : vector<16x32xf32>, vector<32x32xf32>, vector<16x32xf32> -> vector<16x32xf32>
    %c0_42 = arith.constant 0 : index
    %c0_43 = arith.constant 0 : index
    %106 = vector.load %arg14[%c0_42, %c0_43] : memref<1x32xf32, #tpu.memory_space<vmem>>, vector<1x32xf32>
    %107 = vector.broadcast %106 : vector<1x32xf32> to vector<16x32xf32>
    %108 = arith.addf %105, %107 : vector<16x32xf32>
    %c0_44 = arith.constant 0 : index
    %c0_45 = arith.constant 0 : index
    %109 = vector.load %arg15[%c0_44, %c0_45] : memref<32x32xf32, #tpu.memory_space<vmem>>, vector<32x32xf32>
    %cst_46 = arith.constant dense<0.000000e+00> : vector<16x32xf32>
    %110 = tpu.matmul %5, %109, %cst_46 {dimension_numbers = #tpu.dot_dimension_numbers<[1], [0], [0], [1], [0, 0, 1, 1], [], []>} : vector<16x32xf32>, vector<32x32xf32>, vector<16x32xf32> -> vector<16x32xf32>
    %c0_47 = arith.constant 0 : index
    %c0_48 = arith.constant 0 : index
    %111 = vector.load %arg16[%c0_47, %c0_48] : memref<1x32xf32, #tpu.memory_space<vmem>>, vector<1x32xf32>
    %112 = vector.broadcast %111 : vector<1x32xf32> to vector<16x32xf32>
    %113 = arith.addf %110, %112 : vector<16x32xf32>
    %114 = vector.extract_strided_slice %103 {offsets = [0, 0], sizes = [8, 8], strides = [1, 1]} : vector<8x32xf32> to vector<8x8xf32>
    %115 = vector.extract_strided_slice %103 {offsets = [0, 8], sizes = [8, 8], strides = [1, 1]} : vector<8x32xf32> to vector<8x8xf32>
    %116 = vector.extract_strided_slice %103 {offsets = [0, 16], sizes = [8, 8], strides = [1, 1]} : vector<8x32xf32> to vector<8x8xf32>
    %117 = vector.extract_strided_slice %103 {offsets = [0, 24], sizes = [8, 8], strides = [1, 1]} : vector<8x32xf32> to vector<8x8xf32>
    %118 = vector.shape_cast %114 : vector<8x8xf32> to vector<1x8x8xf32>
    %119 = vector.shape_cast %115 : vector<8x8xf32> to vector<1x8x8xf32>
    %120 = vector.shape_cast %116 : vector<8x8xf32> to vector<1x8x8xf32>
    %121 = vector.shape_cast %117 : vector<8x8xf32> to vector<1x8x8xf32>
    %122 = tpu.concatenate %118, %119, %120, %121 in 0 : vector<1x8x8xf32>, vector<1x8x8xf32>, vector<1x8x8xf32>, vector<1x8x8xf32> -> vector<4x8x8xf32>
    %123 = vector.extract_strided_slice %108 {offsets = [0, 0], sizes = [16, 8], strides = [1, 1]} : vector<16x32xf32> to vector<16x8xf32>
    %124 = vector.extract_strided_slice %108 {offsets = [0, 8], sizes = [16, 8], strides = [1, 1]} : vector<16x32xf32> to vector<16x8xf32>
    %125 = vector.extract_strided_slice %108 {offsets = [0, 16], sizes = [16, 8], strides = [1, 1]} : vector<16x32xf32> to vector<16x8xf32>
    %126 = vector.extract_strided_slice %108 {offsets = [0, 24], sizes = [16, 8], strides = [1, 1]} : vector<16x32xf32> to vector<16x8xf32>
    %127 = vector.shape_cast %123 : vector<16x8xf32> to vector<1x16x8xf32>
    %128 = vector.shape_cast %124 : vector<16x8xf32> to vector<1x16x8xf32>
    %129 = vector.shape_cast %125 : vector<16x8xf32> to vector<1x16x8xf32>
    %130 = vector.shape_cast %126 : vector<16x8xf32> to vector<1x16x8xf32>
    %131 = tpu.concatenate %127, %128, %129, %130 in 0 : vector<1x16x8xf32>, vector<1x16x8xf32>, vector<1x16x8xf32>, vector<1x16x8xf32> -> vector<4x16x8xf32>
    %132 = vector.extract_strided_slice %113 {offsets = [0, 0], sizes = [16, 8], strides = [1, 1]} : vector<16x32xf32> to vector<16x8xf32>
    %133 = vector.extract_strided_slice %113 {offsets = [0, 8], sizes = [16, 8], strides = [1, 1]} : vector<16x32xf32> to vector<16x8xf32>
    %134 = vector.extract_strided_slice %113 {offsets = [0, 16], sizes = [16, 8], strides = [1, 1]} : vector<16x32xf32> to vector<16x8xf32>
    %135 = vector.extract_strided_slice %113 {offsets = [0, 24], sizes = [16, 8], strides = [1, 1]} : vector<16x32xf32> to vector<16x8xf32>
    %136 = vector.shape_cast %132 : vector<16x8xf32> to vector<1x16x8xf32>
    %137 = vector.shape_cast %133 : vector<16x8xf32> to vector<1x16x8xf32>
    %138 = vector.shape_cast %134 : vector<16x8xf32> to vector<1x16x8xf32>
    %139 = vector.shape_cast %135 : vector<16x8xf32> to vector<1x16x8xf32>
    %140 = tpu.concatenate %136, %137, %138, %139 in 0 : vector<1x16x8xf32>, vector<1x16x8xf32>, vector<1x16x8xf32>, vector<1x16x8xf32> -> vector<4x16x8xf32>
    "tpu.trace_start"() <{level = 10 : i32, message = "hqd,hkd->hqk"}> : () -> ()
    %cst_49 = arith.constant dense<0.000000e+00> : vector<4x8x16xf32>
    %141 = tpu.matmul %122, %131, %cst_49 {dimension_numbers = #tpu.dot_dimension_numbers<[2], [2], [1], [1], [0, 0, 0, 1, 1, 1], [0], [0]>} : vector<4x8x8xf32>, vector<4x16x8xf32>, vector<4x8x16xf32> -> vector<4x8x16xf32>
    "tpu.trace_stop"() : () -> ()
    %cst_50 = arith.constant dense<0xFF800000> : vector<4x8xf32>
    %142 = vector.multi_reduction <maximumf>, %141, %cst_50 [2] : vector<4x8x16xf32> to vector<4x8xf32>
    %143 = vector.shape_cast %142 : vector<4x8xf32> to vector<4x8x1xf32>
    %144 = vector.broadcast %143 : vector<4x8x1xf32> to vector<4x8x16xf32>
    %145 = arith.subf %141, %144 : vector<4x8x16xf32>
    %146 = math.exp %145 : vector<4x8x16xf32>
    %cst_51 = arith.constant dense<0.000000e+00> : vector<4x8xf32>
    %147 = vector.multi_reduction <add>, %146, %cst_51 [2] : vector<4x8x16xf32> to vector<4x8xf32>
    %148 = vector.shape_cast %147 : vector<4x8xf32> to vector<4x8x1xf32>
    %149 = vector.broadcast %148 : vector<4x8x1xf32> to vector<4x8x16xf32>
    %150 = arith.divf %146, %149 : vector<4x8x16xf32>
    "tpu.trace_start"() <{level = 10 : i32, message = "hqk,hkd->hqd"}> : () -> ()
    %cst_52 = arith.constant dense<0.000000e+00> : vector<4x8x8xf32>
    %151 = tpu.matmul %150, %140, %cst_52 {dimension_numbers = #tpu.dot_dimension_numbers<[2], [1], [1], [2], [0, 0, 0, 1, 1, 2], [0], [0]>} : vector<4x8x16xf32>, vector<4x16x8xf32>, vector<4x8x8xf32> -> vector<4x8x8xf32>
    "tpu.trace_stop"() : () -> ()
    %152 = vector.extract_strided_slice %151 {offsets = [0, 0, 0], sizes = [1, 8, 8], strides = [1, 1, 1]} : vector<4x8x8xf32> to vector<1x8x8xf32>
    %153 = vector.shape_cast %152 : vector<1x8x8xf32> to vector<8x8xf32>
    %154 = vector.extract_strided_slice %151 {offsets = [1, 0, 0], sizes = [1, 8, 8], strides = [1, 1, 1]} : vector<4x8x8xf32> to vector<1x8x8xf32>
    %155 = vector.shape_cast %154 : vector<1x8x8xf32> to vector<8x8xf32>
    %156 = vector.extract_strided_slice %151 {offsets = [2, 0, 0], sizes = [1, 8, 8], strides = [1, 1, 1]} : vector<4x8x8xf32> to vector<1x8x8xf32>
    %157 = vector.shape_cast %156 : vector<1x8x8xf32> to vector<8x8xf32>
    %158 = vector.extract_strided_slice %151 {offsets = [3, 0, 0], sizes = [1, 8, 8], strides = [1, 1, 1]} : vector<4x8x8xf32> to vector<1x8x8xf32>
    %159 = vector.shape_cast %158 : vector<1x8x8xf32> to vector<8x8xf32>
    %160 = tpu.concatenate %153, %155, %157, %159 in 1 : vector<8x8xf32>, vector<8x8xf32>, vector<8x8xf32>, vector<8x8xf32> -> vector<8x32xf32>
    %c0_53 = arith.constant 0 : index
    %c0_54 = arith.constant 0 : index
    %161 = vector.load %arg17[%c0_53, %c0_54] : memref<32x32xf32, #tpu.memory_space<vmem>>, vector<32x32xf32>
    %cst_55 = arith.constant dense<0.000000e+00> : vector<8x32xf32>
    %162 = tpu.matmul %160, %161, %cst_55 {dimension_numbers = #tpu.dot_dimension_numbers<[1], [0], [0], [1], [0, 0, 1, 1], [], []>} : vector<8x32xf32>, vector<32x32xf32>, vector<8x32xf32> -> vector<8x32xf32>
    %c0_56 = arith.constant 0 : index
    %c0_57 = arith.constant 0 : index
    %163 = vector.load %arg18[%c0_56, %c0_57] : memref<1x32xf32, #tpu.memory_space<vmem>>, vector<1x32xf32>
    %164 = vector.broadcast %163 : vector<1x32xf32> to vector<8x32xf32>
    %165 = arith.addf %162, %164 : vector<8x32xf32>
    %166 = arith.addf %165, %98 : vector<8x32xf32>
    %cst_58 = arith.constant dense<0.000000e+00> : vector<8xf32>
    %167 = vector.multi_reduction <add>, %166, %cst_58 [1] : vector<8x32xf32> to vector<8xf32>
    %168 = vector.shape_cast %167 : vector<8xf32> to vector<8x1xf32>
    %cst_59 = arith.constant 3.200000e+01 : f32
    %169 = vector.broadcast %cst_59 : f32 to vector<8x1xf32>
    %170 = arith.divf %168, %169 : vector<8x1xf32>
    %171 = vector.broadcast %170 : vector<8x1xf32> to vector<8x32xf32>
    %172 = arith.subf %166, %171 : vector<8x32xf32>
    %173 = arith.mulf %172, %172 : vector<8x32xf32>
    %cst_60 = arith.constant dense<0.000000e+00> : vector<8xf32>
    %174 = vector.multi_reduction <add>, %173, %cst_60 [1] : vector<8x32xf32> to vector<8xf32>
    %175 = vector.shape_cast %174 : vector<8xf32> to vector<8x1xf32>
    %cst_61 = arith.constant 3.200000e+01 : f32
    %176 = vector.broadcast %cst_61 : f32 to vector<8x1xf32>
    %177 = arith.divf %175, %176 : vector<8x1xf32>
    %178 = vector.broadcast %170 : vector<8x1xf32> to vector<8x32xf32>
    %179 = arith.subf %166, %178 : vector<8x32xf32>
    %cst_62 = arith.constant 9.99999974E-6 : f32
    %180 = vector.broadcast %cst_62 : f32 to vector<8x1xf32>
    %181 = arith.addf %177, %180 : vector<8x1xf32>
    %182 = math.rsqrt %181 : vector<8x1xf32>
    %183 = vector.broadcast %182 : vector<8x1xf32> to vector<8x32xf32>
    %184 = arith.mulf %179, %183 : vector<8x32xf32>
    %c0_63 = arith.constant 0 : index
    %c0_64 = arith.constant 0 : index
    %185 = vector.load %arg19[%c0_63, %c0_64] : memref<1x32xf32, #tpu.memory_space<vmem>>, vector<1x32xf32>
    %186 = vector.broadcast %185 : vector<1x32xf32> to vector<8x32xf32>
    %187 = arith.mulf %184, %186 : vector<8x32xf32>
    %c0_65 = arith.constant 0 : index
    %c0_66 = arith.constant 0 : index
    %188 = vector.load %arg20[%c0_65, %c0_66] : memref<1x32xf32, #tpu.memory_space<vmem>>, vector<1x32xf32>
    %189 = vector.broadcast %188 : vector<1x32xf32> to vector<8x32xf32>
    %190 = arith.addf %187, %189 : vector<8x32xf32>
    %c0_67 = arith.constant 0 : index
    %c0_68 = arith.constant 0 : index
    %191 = vector.load %arg21[%c0_67, %c0_68] : memref<32x64xf32, #tpu.memory_space<vmem>>, vector<32x64xf32>
    %cst_69 = arith.constant dense<0.000000e+00> : vector<8x64xf32>
    %192 = tpu.matmul %190, %191, %cst_69 {dimension_numbers = #tpu.dot_dimension_numbers<[1], [0], [0], [1], [0, 0, 1, 1], [], []>} : vector<8x32xf32>, vector<32x64xf32>, vector<8x64xf32> -> vector<8x64xf32>
    %c0_70 = arith.constant 0 : index
    %c0_71 = arith.constant 0 : index
    %193 = vector.load %arg22[%c0_70, %c0_71] : memref<1x64xf32, #tpu.memory_space<vmem>>, vector<1x64xf32>
    %194 = vector.broadcast %193 : vector<1x64xf32> to vector<8x64xf32>
    %195 = arith.addf %192, %194 : vector<8x64xf32>
    %cst_72 = arith.constant 0.000000e+00 : f32
    %196 = vector.broadcast %cst_72 : f32 to vector<8x64xf32>
    %197 = arith.cmpf ogt, %195, %196 : vector<8x64xf32>
    %cst_73 = arith.constant 5.000000e-02 : f32
    %198 = vector.broadcast %cst_73 : f32 to vector<8x64xf32>
    %199 = arith.mulf %198, %195 : vector<8x64xf32>
    %200 = arith.select %197, %195, %199 : vector<8x64xi1>, vector<8x64xf32>
    %c0_74 = arith.constant 0 : index
    %c0_75 = arith.constant 0 : index
    %201 = vector.load %arg23[%c0_74, %c0_75] : memref<64x32xf32, #tpu.memory_space<vmem>>, vector<64x32xf32>
    %cst_76 = arith.constant dense<0.000000e+00> : vector<8x32xf32>
    %202 = tpu.matmul %200, %201, %cst_76 {dimension_numbers = #tpu.dot_dimension_numbers<[1], [0], [0], [1], [0, 0, 1, 1], [], []>} : vector<8x64xf32>, vector<64x32xf32>, vector<8x32xf32> -> vector<8x32xf32>
    %c0_77 = arith.constant 0 : index
    %c0_78 = arith.constant 0 : index
    %203 = vector.load %arg24[%c0_77, %c0_78] : memref<1x32xf32, #tpu.memory_space<vmem>>, vector<1x32xf32>
    %204 = vector.broadcast %203 : vector<1x32xf32> to vector<8x32xf32>
    %205 = arith.addf %202, %204 : vector<8x32xf32>
    %206 = arith.addf %205, %190 : vector<8x32xf32>
    %cst_79 = arith.constant dense<0.000000e+00> : vector<8xf32>
    %207 = vector.multi_reduction <add>, %206, %cst_79 [1] : vector<8x32xf32> to vector<8xf32>
    %208 = vector.shape_cast %207 : vector<8xf32> to vector<8x1xf32>
    %cst_80 = arith.constant 3.200000e+01 : f32
    %209 = vector.broadcast %cst_80 : f32 to vector<8x1xf32>
    %210 = arith.divf %208, %209 : vector<8x1xf32>
    %211 = vector.broadcast %210 : vector<8x1xf32> to vector<8x32xf32>
    %212 = arith.subf %206, %211 : vector<8x32xf32>
    %213 = arith.mulf %212, %212 : vector<8x32xf32>
    %cst_81 = arith.constant dense<0.000000e+00> : vector<8xf32>
    %214 = vector.multi_reduction <add>, %213, %cst_81 [1] : vector<8x32xf32> to vector<8xf32>
    %215 = vector.shape_cast %214 : vector<8xf32> to vector<8x1xf32>
    %cst_82 = arith.constant 3.200000e+01 : f32
    %216 = vector.broadcast %cst_82 : f32 to vector<8x1xf32>
    %217 = arith.divf %215, %216 : vector<8x1xf32>
    %218 = vector.broadcast %210 : vector<8x1xf32> to vector<8x32xf32>
    %219 = arith.subf %206, %218 : vector<8x32xf32>
    %cst_83 = arith.constant 9.99999974E-6 : f32
    %220 = vector.broadcast %cst_83 : f32 to vector<8x1xf32>
    %221 = arith.addf %217, %220 : vector<8x1xf32>
    %222 = math.rsqrt %221 : vector<8x1xf32>
    %223 = vector.broadcast %222 : vector<8x1xf32> to vector<8x32xf32>
    %224 = arith.mulf %219, %223 : vector<8x32xf32>
    %c0_84 = arith.constant 0 : index
    %c0_85 = arith.constant 0 : index
    %225 = vector.load %arg25[%c0_84, %c0_85] : memref<1x32xf32, #tpu.memory_space<vmem>>, vector<1x32xf32>
    %226 = vector.broadcast %225 : vector<1x32xf32> to vector<8x32xf32>
    %227 = arith.mulf %224, %226 : vector<8x32xf32>
    %c0_86 = arith.constant 0 : index
    %c0_87 = arith.constant 0 : index
    %228 = vector.load %arg26[%c0_86, %c0_87] : memref<1x32xf32, #tpu.memory_space<vmem>>, vector<1x32xf32>
    %229 = vector.broadcast %228 : vector<1x32xf32> to vector<8x32xf32>
    %230 = arith.addf %227, %229 : vector<8x32xf32>
    %c0_88 = arith.constant 0 : index
    %c0_89 = arith.constant 0 : index
    %c0_90 = arith.constant 0 : index
    %231 = vector.load %arg27[%c0_88, %c0_89, %c0_90] : memref<1x8x32xf32, #tpu.memory_space<vmem>>, vector<1x8x32xf32>
    %232 = vector.shape_cast %231 : vector<1x8x32xf32> to vector<8x32xf32>
    %233 = vector.shape_cast %230 : vector<8x32xf32> to vector<1x8x32xf32>
    tpu.vector_store %arg27[%c0_88, %c0_89, %c0_90], %233 {strides = array<i32>} : memref<1x8x32xf32, #tpu.memory_space<vmem>>, vector<1x8x32xf32>,
    return
  }
  func.func @transform_0(%arg0: i32) -> (i32, i32, i32) {
    %c0_i32 = arith.constant 0 : i32
    %c0_i32_0 = arith.constant 0 : i32
    %c0_i32_1 = arith.constant 0 : i32
    return %arg0, %c0_i32, %c0_i32_0 : i32, i32, i32
  }
  func.func @transform_1(%arg0: i32) -> (i32, i32, i32) {
    %c0_i32 = arith.constant 0 : i32
    %c0_i32_0 = arith.constant 0 : i32
    %c0_i32_1 = arith.constant 0 : i32
    return %arg0, %c0_i32, %c0_i32_0 : i32, i32, i32
  }
  func.func @transform_2(%arg0: i32) -> (i32, i32, i32) {
    %c0_i32 = arith.constant 0 : i32
    %c0_i32_0 = arith.constant 0 : i32
    %c0_i32_1 = arith.constant 0 : i32
    return %arg0, %c0_i32, %c0_i32_0 : i32, i32, i32
  }
  func.func @transform_3(%arg0: i32) -> (i32, i32) {
    %c0_i32 = arith.constant 0 : i32
    %c0_i32_0 = arith.constant 0 : i32
    %c0_i32_1 = arith.constant 0 : i32
    return %c0_i32, %c0_i32_0 : i32, i32
  }
  func.func @transform_4(%arg0: i32) -> (i32, i32) {
    %c0_i32 = arith.constant 0 : i32
    %c0_i32_0 = arith.constant 0 : i32
    %c0_i32_1 = arith.constant 0 : i32
    return %c0_i32, %c0_i32_0 : i32, i32
  }
  func.func @transform_5(%arg0: i32) -> (i32, i32) {
    %c0_i32 = arith.constant 0 : i32
    %c0_i32_0 = arith.constant 0 : i32
    %c0_i32_1 = arith.constant 0 : i32
    return %c0_i32, %c0_i32_0 : i32, i32
  }
  func.func @transform_6(%arg0: i32) -> (i32, i32) {
    %c0_i32 = arith.constant 0 : i32
    %c0_i32_0 = arith.constant 0 : i32
    %c0_i32_1 = arith.constant 0 : i32
    return %c0_i32, %c0_i32_0 : i32, i32
  }
  func.func @transform_7(%arg0: i32) -> (i32, i32) {
    %c0_i32 = arith.constant 0 : i32
    %c0_i32_0 = arith.constant 0 : i32
    %c0_i32_1 = arith.constant 0 : i32
    return %c0_i32, %c0_i32_0 : i32, i32
  }
  func.func @transform_8(%arg0: i32) -> (i32, i32) {
    %c0_i32 = arith.constant 0 : i32
    %c0_i32_0 = arith.constant 0 : i32
    %c0_i32_1 = arith.constant 0 : i32
    return %c0_i32, %c0_i32_0 : i32, i32
  }
  func.func @transform_9(%arg0: i32) -> (i32, i32) {
    %c0_i32 = arith.constant 0 : i32
    %c0_i32_0 = arith.constant 0 : i32
    %c0_i32_1 = arith.constant 0 : i32
    return %c0_i32, %c0_i32_0 : i32, i32
  }
  func.func @transform_10(%arg0: i32) -> (i32, i32) {
    %c0_i32 = arith.constant 0 : i32
    %c0_i32_0 = arith.constant 0 : i32
    %c0_i32_1 = arith.constant 0 : i32
    return %c0_i32, %c0_i32_0 : i32, i32
  }
  func.func @transform_11(%arg0: i32) -> (i32, i32) {
    %c0_i32 = arith.constant 0 : i32
    %c0_i32_0 = arith.constant 0 : i32
    %c0_i32_1 = arith.constant 0 : i32
    return %c0_i32, %c0_i32_0 : i32, i32
  }
  func.func @transform_12(%arg0: i32) -> (i32, i32) {
    %c0_i32 = arith.constant 0 : i32
    %c0_i32_0 = arith.constant 0 : i32
    %c0_i32_1 = arith.constant 0 : i32
    return %c0_i32, %c0_i32_0 : i32, i32
  }
  func.func @transform_13(%arg0: i32) -> (i32, i32) {
    %c0_i32 = arith.constant 0 : i32
    %c0_i32_0 = arith.constant 0 : i32
    %c0_i32_1 = arith.constant 0 : i32
    return %c0_i32, %c0_i32_0 : i32, i32
  }
  func.func @transform_14(%arg0: i32) -> (i32, i32) {
    %c0_i32 = arith.constant 0 : i32
    %c0_i32_0 = arith.constant 0 : i32
    %c0_i32_1 = arith.constant 0 : i32
    return %c0_i32, %c0_i32_0 : i32, i32
  }
  func.func @transform_15(%arg0: i32) -> (i32, i32) {
    %c0_i32 = arith.constant 0 : i32
    %c0_i32_0 = arith.constant 0 : i32
    %c0_i32_1 = arith.constant 0 : i32
    return %c0_i32, %c0_i32_0 : i32, i32
  }
  func.func @transform_16(%arg0: i32) -> (i32, i32) {
    %c0_i32 = arith.constant 0 : i32
    %c0_i32_0 = arith.constant 0 : i32
    %c0_i32_1 = arith.constant 0 : i32
    return %c0_i32, %c0_i32_0 : i32, i32
  }
  func.func @transform_17(%arg0: i32) -> (i32, i32) {
    %c0_i32 = arith.constant 0 : i32
    %c0_i32_0 = arith.constant 0 : i32
    %c0_i32_1 = arith.constant 0 : i32
    return %c0_i32, %c0_i32_0 : i32, i32
  }
  func.func @transform_18(%arg0: i32) -> (i32, i32) {
    %c0_i32 = arith.constant 0 : i32
    %c0_i32_0 = arith.constant 0 : i32
    %c0_i32_1 = arith.constant 0 : i32
    return %c0_i32, %c0_i32_0 : i32, i32
  }
  func.func @transform_19(%arg0: i32) -> (i32, i32) {
    %c0_i32 = arith.constant 0 : i32
    %c0_i32_0 = arith.constant 0 : i32
    %c0_i32_1 = arith.constant 0 : i32
    return %c0_i32, %c0_i32_0 : i32, i32
  }
  func.func @transform_20(%arg0: i32) -> (i32, i32) {
    %c0_i32 = arith.constant 0 : i32
    %c0_i32_0 = arith.constant 0 : i32
    %c0_i32_1 = arith.constant 0 : i32
    return %c0_i32, %c0_i32_0 : i32, i32
  }
  func.func @transform_21(%arg0: i32) -> (i32, i32) {
    %c0_i32 = arith.constant 0 : i32
    %c0_i32_0 = arith.constant 0 : i32
    %c0_i32_1 = arith.constant 0 : i32
    return %c0_i32, %c0_i32_0 : i32, i32
  }
  func.func @transform_22(%arg0: i32) -> (i32, i32) {
    %c0_i32 = arith.constant 0 : i32
    %c0_i32_0 = arith.constant 0 : i32
    %c0_i32_1 = arith.constant 0 : i32
    return %c0_i32, %c0_i32_0 : i32, i32
  }
  func.func @transform_23(%arg0: i32) -> (i32, i32) {
    %c0_i32 = arith.constant 0 : i32
    %c0_i32_0 = arith.constant 0 : i32
    %c0_i32_1 = arith.constant 0 : i32
    return %c0_i32, %c0_i32_0 : i32, i32
  }
  func.func @transform_24(%arg0: i32) -> (i32, i32) {
    %c0_i32 = arith.constant 0 : i32
    %c0_i32_0 = arith.constant 0 : i32
    %c0_i32_1 = arith.constant 0 : i32
    return %c0_i32, %c0_i32_0 : i32, i32
  }
  func.func @transform_25(%arg0: i32) -> (i32, i32) {
    %c0_i32 = arith.constant 0 : i32
    %c0_i32_0 = arith.constant 0 : i32
    %c0_i32_1 = arith.constant 0 : i32
    return %c0_i32, %c0_i32_0 : i32, i32
  }
  func.func @transform_26(%arg0: i32) -> (i32, i32, i32) {
    %c0_i32 = arith.constant 0 : i32
    %c0_i32_0 = arith.constant 0 : i32
    %c0_i32_1 = arith.constant 0 : i32
    return %arg0, %c0_i32, %c0_i32_0 : i32, i32, i32
  }
}

</mosaic_0001>

<bundles_post_ra>
// kernel: tpu_custom_call.1
= control target key start
LH: loop header
LB: loop body
LE: loop exit
PB: predicated region body
PF: predicated region fallthrough
CT: control target
= control target key end

     0   :  { %s3421_s0 = inlined_call_operand.hbm [shape: f32[2,8,32], index: 0, kind: input, shape index: {}]   ;;  %s3422_s1 = inlined_call_operand.vmem [shape: f32[2,16,32], index: 1, kind: input, shape index: {}]   ;;  %s3423_s2 = inlined_call_operand.vmem [shape: f32[2,16,32], index: 2, kind: input, shape index: {}]   ;;  %s3424_s3 = inlined_call_operand.hbm [shape: f32[8,8], index: 3, kind: input, shape index: {}]   ;;  %s3425_s4 = inlined_call_operand.vmem [shape: f32[32,96], index: 4, kind: input, shape index: {}]   ;;  %s3426_s5 = inlined_call_operand.vmem [shape: f32[1,96], index: 5, kind: input, shape index: {}]   ;;  %s3427_s6 = inlined_call_operand.hbm [shape: f32[32,32], index: 6, kind: input, shape index: {}]   ;;  %s3428_s7 = inlined_call_operand.vmem [shape: f32[1,32], index: 7, kind: input, shape index: {}]   ;;  %s3429_s8 = inlined_call_operand.vmem [shape: f32[1,32], index: 8, kind: input, shape index: {}]   ;;  %s3430_s9 = inlined_call_operand.vmem [shape: f32[1,32], index: 9, kind: input, shape index: {}]   ;;  %s3431_s10 = inlined_call_operand.hbm [shape: f32[32,32], index: 10, kind: input, shape index: {}]   ;;  %s3432_s11 = inlined_call_operand.vmem [shape: f32[1,32], index: 11, kind: input, shape index: {}]   ;;  %s3433_s12 = inlined_call_operand.hbm [shape: f32[32,32], index: 12, kind: input, shape index: {}]   ;;  %s3434_s13 = inlined_call_operand.vmem [shape: f32[1,32], index: 13, kind: input, shape index: {}]   ;;  %s3435_s14 = inlined_call_operand.hbm [shape: f32[32,32], index: 14, kind: input, shape index: {}]   ;;  %s3436_s15 = inlined_call_operand.vmem [shape: f32[1,32], index: 15, kind: input, shape index: {}]   ;;  %s3437_s16 = inlined_call_operand.hbm [shape: f32[32,32], index: 16, kind: input, shape index: {}]   ;;  %s3438_s17 = inlined_call_operand.vmem [shape: f32[1,32], index: 17, kind: input, shape index: {}]   ;;  %s3439_s18 = inlined_call_operand.vmem [shape: f32[1,32], index: 18, kind: input, shape index: {}]   ;;  %s3440_s19 = inlined_call_operand.vmem [shape: f32[1,32], index: 19, kind: input, shape index: {}]   ;;  %s3441_s20 = inlined_call_operand.hbm [shape: f32[32,64], index: 20, kind: input, shape index: {}]   ;;  %s3442_s21 = inlined_call_operand.vmem [shape: f32[1,64], index: 21, kind: input, shape index: {}]   ;;  %s3443_s22 = inlined_call_operand.vmem [shape: f32[64,32], index: 22, kind: input, shape index: {}]   ;;  %s3444_s23 = inlined_call_operand.vmem [shape: f32[1,32], index: 23, kind: input, shape index: {}]   ;;  %s3445_s24 = inlined_call_operand.vmem [shape: f32[1,32], index: 24, kind: input, shape index: {}]   ;;  %s3446_s25 = inlined_call_operand.vmem [shape: f32[1,32], index: 25, kind: input, shape index: {}]   ;;  %s3447_s26 = inlined_call_operand.hbm [shape: f32[2,8,32], index: 26, kind: output, shape index: {}]  }
   0x1   :  { %3453 = sst [smem:[#allocation23_spill]] %s3421_s0 }
   0x2   :  { %3454 = sst [smem:[#allocation24_spill]] %s3422_s1 }
   0x3   :  { %3455 = sst [smem:[#allocation25_spill]] %s3423_s2 }
   0x4   :  { %3456 = sst [smem:[#allocation26_spill]] %s3424_s3 }
   0x5   :  { %3457 = sst [smem:[#allocation27_spill]] %s3425_s4 }
   0x6   :  { %3458 = sst [smem:[#allocation28_spill]] %s3426_s5 }
   0x7   :  { %3459 = sst [smem:[#allocation29_spill]] %s3427_s6 }
   0x8   :  { %3460 = sst [smem:[#allocation30_spill]] %s3428_s7 }
   0x9   :  { %3461 = sst [smem:[#allocation31_spill]] %s3429_s8 }
   0xa   :  { %3462 = sst [smem:[#allocation32_spill]] %s3430_s9 }
   0xb   :  { %3463 = sst [smem:[#allocation33_spill]] %s3431_s10 }
   0xc   :  { %3464 = sst [smem:[#allocation34_spill]] %s3432_s11 }
   0xd   :  { %3465 = sst [smem:[#allocation35_spill]] %s3433_s12 }
   0xe   :  { %3466 = sst [smem:[#allocation36_spill]] %s3435_s14 }
   0xf   :  { %3467 = sst [smem:[#allocation37_spill]] %s3437_s16 }
  0x10   :  { %3468 = sst [smem:[#allocation38_spill]] %s3440_s19 }
  0x11   :  { %3469 = sst [smem:[#allocation39_spill]] %s3441_s20 }
  0x12   :  { %3470 = sst [smem:[#allocation40_spill]] %s3442_s21 }
  0x13   :  { %3471 = sst [smem:[#allocation41_spill]] %s3444_s23 }
  0x14   :  { %3472 = sst [smem:[#allocation42_spill]] %s3445_s24 }
  0x15   :  { %3473 = sst [smem:[#allocation43_spill]] %s3446_s25 }
  0x16   :  { %3474 = sst [smem:[#allocation44_spill]] %s3447_s26 }
  0x17   :  { %31 = vsyncpa [#allocation3], 0 }
  0x18   :  { %33 = vsyncpa [#allocation3 + $0x1], 0 }
  0x19   :  { %34 = vsyncpa [#allocation6], 0 }
  0x1a   :  { %35 = vsyncpa [#allocation9], 0 }
  0x1b   :  { %36 = vsyncpa [#allocation12], 0 }
  0x1c   :  { %37 = vsyncpa [#allocation15], 0 }
  0x1d   :  { %38 = vsyncpa [#allocation4], 0 }
  0x1e   :  { %40 = vsyncpa [#allocation4 + $0x1], 0  ;;  %s2955_s27 = smov 0   ;;  %s2957_s3 = smov 0  }
  0x1f   :  { %s2959_s7 = smov 0   ;;  %s2961_s28 = smov 0  }
  0x20 LB: > { %s3475_s29 = sld [smem:[#allocation26_spill]]  ;;  %s2979_s9 = sadd.s32 4294967295, %s2800_s28   ;;  %s2800_s28 = sphi %s2961_s28, %s3515_s28   ;;  %s2796_s7 = sphi %s2959_s7, %s3514_s7   ;;  %s2792_s3 = sphi %s2957_s3, %s3513_s3   ;;  %s2788_s27 = sphi %s2955_s27, %s3512_s27  }
  0x21   : > { %p2207_p0 = scmp.ge.s32.totalorder %s2800_s28, 1  ;;  %p67_p1 = scmp.eq.s32.totalorder %s2979_s9, 0 }
  0x22   : > { %p638_p2 = scmp.lt.s32.totalorder %s2800_s28, 3  ;;  %s2802_s2 = smov [#allocation5]  }
  0x23   : > { %s652_s5 = sshll.u32 %s2802_s2, 4  ;;  %s3477_s1 = sld [smem:[#allocation33_spill]]  ;;  %s653_s5 = int_to_ptr.vmem [resolvable:$true] %s652_s5 }
  0x24   : > { %p2984_p3 = pnand %p2207_p0, %p638_p2  ;;  %s3479_s14 = sld [smem:[#allocation36_spill]] }
  0x25   : > { %s2803_s26 = smov [#allocation8]   ;;  %s2804_s10 = smov 128  }
  0x26   : > { %s650_s0 = sshll.u32 %s3475_s29, 4  ;;  %p2308_p5 = pneg %p2984_p3  ;;  %s651_s0 = int_to_ptr.hbm [resolvable:$true] %s650_s0 }
  0x27   : > { %s692_s24 = sshll.u32 %s2803_s26, 4  ;;  %s2805_s6 = smov 8   ;;  %s693_s24 = int_to_ptr.vmem [resolvable:$true] %s692_s24 }
  0x28   : > { %p2996_p6 = pnand %p2308_p5, %p67_p1  ;;  %s3480_s21 = sld [smem:[#allocation29_spill]] }
  0x29   : > { %s690_s8 = sshll.u32 %s3477_s1, 4  ;;  %s2806_s25 = smov [#allocation11]   ;;  %s691_s8 = int_to_ptr.hbm [resolvable:$true] %s690_s8 }
  0x2a   : > { %s724_s2 = sshll.u32 %s3479_s14, 4  ;;  %s726_s29 = sshll.u32 %s2806_s25, 4  ;;  %s725_s2 = int_to_ptr.hbm [resolvable:$true] %s724_s2  ;;  %s727_s29 = int_to_ptr.vmem [resolvable:$true] %s726_s29 }
  0x2b   : > { %2311 = dma.hbm_to_vmem [thread:$0]  (!%p2996_p6), %s651_s0, 128, %s653_s5, [#allocation6]  }
  0x2c   : > { %2317 = dma.hbm_to_vmem [thread:$0]  (!%p2996_p6), %s691_s8, 512, %s693_s24, [#allocation9], %s2804_s10, %s2804_s10, %s2805_s6  }
  0x2d   : > { %2323 = dma.hbm_to_vmem [thread:$0]  (!%p2996_p6), %s725_s2, 512, %s727_s29, [#allocation12], %s2804_s10, %s2804_s10, %s2805_s6  }
  0x2e   : > { %s667_s19 = sshll.u32 %s3480_s21, 4  ;;  %s2807_s26 = smov [#allocation7]   ;;  %s668_s19 = int_to_ptr.hbm [resolvable:$true] %s667_s19 }
  0x2f   : > { %s669_s0 = sshll.u32 %s2807_s26, 4  ;;  %s3481_s12 = sld [smem:[#allocation35_spill]]  ;;  %s670_s0 = int_to_ptr.vmem [resolvable:$true] %s669_s0 }
  0x30   : > { %2314 = dma.hbm_to_vmem [thread:$0]  (!%p2996_p6), %s668_s19, 512, %s670_s0, [#allocation6], %s2804_s10, %s2804_s10, %s2805_s6  }
  0x31   : > { %s3482_s16 = sld [smem:[#allocation37_spill]]  ;;  %s2808_s2 = smov [#allocation10]  }
  0x32   : > { %s709_s1 = sshll.u32 %s2808_s2, 4  ;;  %s2809_s14 = smov [#allocation13]   ;;  %s710_s1 = int_to_ptr.vmem [resolvable:$true] %s709_s1 }
  0x33   : > { %s743_s19 = sshll.u32 %s2809_s14, 4  ;;  %s3483_s20 = sld [smem:[#allocation39_spill]]  ;;  %s744_s19 = int_to_ptr.vmem [resolvable:$true] %s743_s19 }
  0x34   : > { %s2810_s0 = smov [#allocation14]   ;;  %s3049_s21 = sadd.s32 1, %s2800_s28  }
  0x35   : > { %s707_s24 = sshll.u32 %s3481_s12, 4  ;;  %s766_s5 = sshll.u32 %s2810_s0, 4  ;;  %s708_s24 = int_to_ptr.hbm [resolvable:$true] %s707_s24  ;;  %s767_s5 = int_to_ptr.vmem [resolvable:$true] %s766_s5 }
  0x36   : > { %2320 = dma.hbm_to_vmem [thread:$0]  (!%p2996_p6), %s708_s24, 512, %s710_s1, [#allocation9], %s2804_s10, %s2804_s10, %s2805_s6  }
  0x37   : > { %s741_s8 = sshll.u32 %s3482_s16, 4  ;;  %s2206_s24 = sadd.s32 4294967294, %s2800_s28   ;;  %s742_s8 = int_to_ptr.hbm [resolvable:$true] %s741_s8 }
  0x38   : > { %2326 = dma.hbm_to_vmem [thread:$0]  (!%p2996_p6), %s742_s8, 512, %s744_s19, [#allocation12], %s2804_s10, %s2804_s10, %s2805_s6  }
  0x39   : > { %s764_s26 = sshll.u32 %s3483_s20, 4  ;;  %s53_s23 = sadd.s32 1, %s2796_s7  ;;  %s765_s26 = int_to_ptr.hbm [resolvable:$true] %s764_s26 }
  0x3a   : > { %2329 = dma.hbm_to_vmem [thread:$0]  (!%p2996_p6), %s765_s26, 512, %s767_s5, [#allocation15], %s2804_s10, %s2804_s10, %s2805_s6  }
  0x3b   : > { %s50_s2 = ssub.s32 %s2800_s28, %s3049_s21  ;;  %p60_p7 = scmp.ne.s32.totalorder %s2796_s7, %s2792_s3 }
  0x3c   : > { %p51_p8 = scmp.eq.s32.totalorder %s50_s2, 0  ;;  %p61_p9 = scmp.eq.s32.totalorder %s2800_s28, 0 }
  0x3d   : > { %p66_p10 = scmp.ne.s32.totalorder %s2792_s3, %s2788_s27  ;;  %p625_p11 = scmp.eq.s32.totalorder %s2979_s9, 1 }
  0x3e   : > { %s3061_s8 = scalar_select %p51_p8, %s2796_s7, %s53_s23  }
  0x3f   : > { %p3065_p12 = por %p67_p1, %p66_p10  ;;  %p3069_p13 = por %p625_p11, %p60_p7 }
  0x40   : > { %p631_p0 = scmp.eq.s32.totalorder %s2206_s24, 1  ;;  %p62_p2 = por %p61_p9, %p60_p7 }
  0x41   : > { %s795_s6 = sand.u32 1, %s2796_s7   ;;  %p2345_p6 = scmp.lt.s32.totalorder %s2800_s28, 2 }
  0x42   : > { %p3074_p5 = por %p631_p0, %p66_p10  ;;  %s2216_s14 = sshll.u32 %s795_s6, 3 }
  0x43   : > { %s2217_s19 = sshll.u32 %s2800_s28, 3  ;;  %s3487_s26 = sld [smem:[#allocation23_spill]] }
  0x44   : > { %s799_s23 = scalar_lea.vmem [#allocation2], %s2216_s14  ;;  %p3083_p8 = pnand %p2345_p6, %p62_p2 }
  0x45   : > { %s807_s2 = sshll.u32 %s799_s23, 4  ;;  %s796_s12 = scalar_lea.sflag [#allocation3], %s795_s6  ;;  %s808_s2 = int_to_ptr.vmem [resolvable:$true] %s807_s2 }
  0x46   : > { %p2692_p9 = pneg %p3083_p8 }
  0x49   : > { %s803_s0 = scalar_lea.hbm %s3487_s26, %s2217_s19  ;;  %s2695_s14 = scalar_lea.hbm %s3487_s26, 16 }
  0x4a   : > { %s805_s5 = sshll.u32 %s803_s0, 4  ;;  %s806_s5 = int_to_ptr.hbm [resolvable:$true] %s805_s5 }
  0x4b   : > { %s2688_s16 = sshra.s32 %s806_s5, 4  ;;  %s2689_s16 = int_to_ptr.hbm [resolvable:$true] %s2688_s16 }
  0x4c   : > { %s2690_s20 = scalar_lea.hbm %s2689_s16, 8  ;;  %p2696_p0 = scmp.lt.s32.totalorder %s2689_s16, %s3487_s26 }
  0x4d   : > { %p2691_p7 = scmp.ne.s32.totalorder %s2689_s16, %s2690_s20  ;;  %p2697_p2 = scmp.lt.s32.totalorder %s2695_s14, %s2690_s20 }
  0x4f   : > { %p2693_p10 = pnand %p2692_p9, %p2691_p7  ;;  %p2698_p6 = por %p2697_p2, %p2696_p0 }
  0x51   : > { %p2694_p11 = pneg %p2693_p10 }
  0x53   : > { %p2699_p4 = pnand %p2698_p6, %p2694_p11 }
  0x55   : > { %2702 = shalt.err (!%p2699_p4)
}
  0x56   : > { %2333 = dma.hbm_to_vmem [thread:$0]  (!%p3083_p8), %s806_s5, 128, %s808_s2, %s796_s12  }
  0x57   : > { %832 = sbr.rel (%p2984_p3) target bundleno = 3383 (0xd37), region = 124  ;;  %s3100_s6 = sand.u32 (!%p2984_p3), 1, %s2792_s3  }
  0x58   : > { %s3451_s23 = sshll.u32 (!%p2984_p3), %s3100_s6, 3  ;;  %s835_s19 = scalar_lea.sflag (!%p2984_p3), [#allocation3], %s3100_s6 }
  0x59   : > { %s838_s16 = scalar_lea.vmem (!%p2984_p3), [#allocation2], %s3451_s23 }
  0x5c   : > { %2763 = dma.done.wait (%p3065_p12), %s835_s19, 128  }
  0x5d   : > { %2765 = vsyncadd (%p3065_p12), %s835_s19, 4294967168 }
  0x5e   : > { %2767 = dma.done.wait (%p67_p1), [#allocation6], 640  }
  0x5f   : > { %2769 = vsyncadd (%p67_p1), [#allocation6], 4294966656 }
  0x60   : > { %2771 = dma.done.wait (%p67_p1), [#allocation9], 1024  }
  0x61   : > { %2773 = vsyncadd (%p67_p1), [#allocation9], 4294966272 }
  0x62   : > { %2775 = dma.done.wait (%p67_p1), [#allocation12], 1024  }
  0x63   : > { %2777 = vsyncadd (%p67_p1), [#allocation12], 4294966272 }
  0x64   : > { %2779 = dma.done.wait (%p67_p1), [#allocation15], 512  }
  0x65   : > { %2781 = vsyncadd (%p67_p1), [#allocation15], 4294966784  ;;  %s3489_s30 = sld [smem:[#allocation27_spill]]  ;;  %vm976_vm0 = vcmask 261120   ;;  %v3138_v4 = vld [vmem:[%s838_s16] sm:$0xff]  ;;  %s2811_s12 = smov 96  }
  0x66   : > { %s3490_s19 = sld [smem:[#allocation28_spill]]  ;;  %s2812_s20 = smov 104   ;;  %vm1010_vm1 = vcmask 64512   ;;  %v1000_v16 = vld [vmem:[#allocation5] sm:$0xff] }
  0x67   : > { %s2813_s16 = smov 120   ;;  %s2814_s4 = smov 112   ;;  %vm1113_vm2 = vcmp.eq.f32.partialorder %v1000_v16, 0.0 }
  0x68   : > { %s2815_s5 = smov 64   ;;  %s2816_s2 = smov 16  }
  0x69   : > { %s2817_s24 = smov 8   ;;  %s3452_s25 = smov 24  }
  0x6a   : > { %s3493_s0 = sld [smem:[#allocation30_spill]]  ;;  %p953_p1 = scmp.lt.s32.totalorder %s2979_s9, 1 }
  0x6b   : > { %v971_v0 = vld [vmem:[%s3489_s30 + $0x18] sm:$0xff]  ;;  %v970_v1 = vld [vmem:[%s3489_s30 + $0x10] sm:$0xff]  ;;  %v969_v2 = vld [vmem:[%s3489_s30 + $0x8] sm:$0xff]  ;;  %s3494_s29 = sld [smem:[#allocation24_spill]] }
  0x6c   : > { %992 = vmatpush.msra.mxu0 %v971_v0  ;;  %v968_v3 = vld [vmem:[%s3489_s30] sm:$0xff]  ;;  %s3497_s11 = sld [smem:[#allocation34_spill]] }
  0x6d   : > { %v2424_v5 = vld [vmem:[%s3490_s19] ss:$0 sm:$0xff]  ;;  %s3217_s19 = scalar_select %p953_p1, %s2979_s9, 1 }
  0x6e   : > { %993 = vmatpush.msra.mxu0 %v970_v1  ;;  %s3507_s23 = sld [smem:[#allocation42_spill]] }
  0x70   : > { %994 = vmatpush.msra.mxu0 %v969_v2 }
  0x72   : > { %995 = vmatpush.msra.mxu0 %v968_v3 }
  0x73   : > { %2232 = vmatmul.msk.f32.vlgmr.msra.gmra.mxu0 %vm976_vm0, %v3138_v4 }
  0xf0   : > { %v997_v6 = vpop.f32.mrf.mxu0 }
  0xf1   : > { %v3145_v7 = vadd.f32 %v2424_v5, %v997_v6 }
  0xf3   : > { %1008 = vrot.lane.b32.xlu2 %v3145_v7, %s2811_s12  ;;  %1006 = vrot.lane.b32.xlu1 %v3145_v7, %s2812_s20 }
  0xf4   : > { %1002 = vrot.lane.b32.xlu0 %v3145_v7, %s2813_s16 }
  0xfc   : > { %1004 = vrot.lane.b32.xlu0 %v3145_v7, %s2814_s4 }
 0x14d   : > { %v1009_v8 = vpop.permute.xlu2 %1008 }
 0x14e   : > { %2233 = vmatpush.xpose.msk.msra.mxu1 %vm1010_vm1, %v1009_v8 }
 0x151   : > { %2234 = vmatmul.msk.f32.vlgmr.msra.gmra.mxu1 %vm1010_vm1, %v3145_v7 }
 0x165   : > { %v3157_v9 = vpop.permute.xlu1 %1006 }
 0x166   : > { %v1003_v10 = vpop.permute.xlu0 %1002  ;;  %1087 = vrot.lane.b32.xlu0 %v3157_v9, %s2811_s12 }
 0x167   : > { %1035 = vrot.lane.b32.xlu1 %v1003_v10, %s2811_s12 }
 0x16e   : > { %v1005_v11 = vpop.permute.xlu0 %1004 }
 0x16f   : > { %1061 = vrot.lane.b32.xlu2 %v1005_v11, %s2811_s12  ;;  %v2404_v48 = vpack.i.bf16 %v3157_v9, %v1005_v11  ;;  %s2274_s12 = sshll.u32 %s3217_s19, 4 }
 0x1c9   : > { %v1062_v14 = vpop.permute.xlu2 %1061 }
 0x1ce   : > { %v1032_v15 = vpop.f32.mrf.mxu1 }
 0x1cf   : > { %v1116_v26 = vsel %vm1113_vm2, -1e+20, %v1032_v15 }
 0x1d0   : > { %v1120_v27 = vsel %vm1010_vm1, %v1116_v26, -inf }
 0x1d8   : > { %v1088_v12 = vpop.permute.xlu0 %1087 }
 0x1d9   : > { %v1036_v13 = vpop.permute.xlu1 %1035  ;;  %2239 = vmatpush.xpose.msk.msrb.mxu1 %vm1010_vm1, %v1088_v12 }
 0x1da   : > { %2235 = vmatpush.xpose.msk.msra.mxu3 %vm1010_vm1, %v1036_v13 }
 0x1dc   : > { %2240 = vmatmul.msk.f32.vlgmr.msrb.gmra.mxu1 %vm1010_vm1, %v3157_v9 }
 0x1dd   : > { %2236 = vmatmul.msk.f32.vlgmr.msra.gmra.mxu3 %vm1010_vm1, %v1003_v10 }
 0x1de   : > { %2237 = vmatpush.xpose.msk.msrb.mxu3 %vm1010_vm1, %v1062_v14 }
 0x1e5   : > { %2238 = vmatmul.msk.f32.vlgmr.msrb.gmra.mxu3 %vm1010_vm1, %v1005_v11 }
 0x259   : > { %v1110_v17 = vpop.f32.mrf.mxu1 }
 0x25a   : > { %v1119_v18 = vsel %vm1113_vm2, -1e+20, %v1110_v17 }
 0x25b   : > { %v1129_v19 = vsel %vm1010_vm1, %v1119_v18, -inf }
 0x25c   : > { %1130 = vmax.xlane.f32.xlu0 %v1129_v19 }
 0x260   : > { %v1058_v20 = vpop.f32.mrf.mxu3 }
 0x261   : > { %v1117_v21 = vsel %vm1113_vm2, -1e+20, %v1058_v20 }
 0x262   : > { %v1123_v22 = vsel %vm1010_vm1, %v1117_v21, -inf }
 0x263   : > { %1124 = vmax.xlane.f32.xlu1 %v1123_v22 }
 0x268   : > { %v1084_v23 = vpop.f32.mrf.mxu3 }
 0x269   : > { %v1118_v24 = vsel %vm1113_vm2, -1e+20, %v1084_v23 }
 0x26a   : > { %v1126_v25 = vsel %vm1010_vm1, %v1118_v24, -inf }
 0x26b   : > { %1127 = vmax.xlane.f32.xlu2 %v1126_v25 }
 0x273   : > { %1121 = vmax.xlane.f32.xlu2 %v1120_v27 }
 0x2cf   : > { %v1131_v28 = vpop.xlane.xlu0 %1130 }
 0x2d0   : > { %v1135_v29 = vsub.f32 %v1119_v18, %v1131_v28 }
 0x2d2   : > { %v1142_v30 = vmul.f32 1.442695, %v1135_v29 }
 0x2d4   : > { %2438 = vpow2.f32 %v1142_v30 }
 0x2d6   : > { %v1125_v31 = vpop.xlane.xlu1 %1124 }
 0x2d7   : > { %v1133_v32 = vsub.f32 %v1117_v21, %v1125_v31 }
 0x2d9   : > { %v1138_v33 = vmul.f32 1.442695, %v1133_v32 }
 0x2da   : > { %v3171_v34 = vpop.eup %2438 }
 0x2db   : > { %2440 = vpow2.f32 %v1138_v33  ;;  %v1153_v35 = vsel %vm1010_vm1, %v3171_v34, 0.0 }
 0x2dc   : > { %1154 = vadd.xlane.f32.xlu0 %v1153_v35 }
 0x2de   : > { %v1128_v36 = vpop.xlane.xlu2 %1127 }
 0x2df   : > { %v1134_v37 = vsub.f32 %v1118_v24, %v1128_v36 }
 0x2e1   : > { %v3175_v38 = vpop.eup %2440  ;;  %v1140_v39 = vmul.f32 1.442695, %v1134_v37 }
 0x2e2   : > { %v1147_v40 = vsel %vm1010_vm1, %v3175_v38, 0.0 }
 0x2e3   : > { %2442 = vpow2.f32 %v1140_v39  ;;  %1148 = vadd.xlane.f32.xlu1 %v1147_v40 }
 0x2e6   : > { %v1122_v41 = vpop.xlane.xlu2 %1121 }
 0x2e7   : > { %v1132_v42 = vsub.f32 %v1116_v26, %v1122_v41 }
 0x2e9   : > { %v3179_v43 = vpop.eup %2442  ;;  %v1136_v44 = vmul.f32 1.442695, %v1132_v42 }
 0x2ea   : > { %v1150_v45 = vsel %vm1010_vm1, %v3179_v43, 0.0 }
 0x2eb   : > { %2444 = vpow2.f32 %v1136_v44  ;;  %1151 = vadd.xlane.f32.xlu2 %v1150_v45  ;;  %v1339_v44 = vld [vmem:[#allocation7 + $0x10] sm:$0xff]  ;;  %v1338_v45 = vld [vmem:[#allocation7 + $0x8] sm:$0xff] }
 0x2f1   : > { %v3183_v46 = vpop.eup %2444 }
 0x2f2   : > { %v1144_v47 = vsel %vm1010_vm1, %v3183_v46, 0.0 }
 0x2f3   : > { %1145 = vadd.xlane.f32.xlu0 %v1144_v47 }
 0x2fc   : > { %1242 = vrot.lane.b32.xlu1 %v1003_v10, %s2815_s5 }
 0x303   : > { %2405 = vrot.lane.b32.xlu2 %v2404_v48, %s2815_s5 }
 0x307   : > { %1216 = vrot.lane.b32.xlu0 %v3145_v7, %s2815_s5  ;;  %s3495_s5 = sld [smem:[#allocation31_spill]] }
 0x34f   : > { %v1155_v49 = vpop.xlane.xlu0 %1154 }
 0x350   : > { %2446 = vrcp.f32 %v1155_v49  ;;  %v1212_v59 = vand.u32 2147483648, %v1155_v49  ;;  %vm1206_vm4 = vweird.f32 %v1155_v49  ;;  %v1210_v61 = vand.u32 2147483647, %v1155_v49 }
 0x352   : > { %v1213_v0 = vor.u32 1.1754944e-38, %v1212_v59  ;;  %vm1211_vm7 = vcmp.eq.f32.partialorder %v1210_v61, 8.507059e+37  ;;  %v2819_v59 = vmov 32.0   ;;  %v1441_v61 = vld [vmem:[#allocation10 + $0x10] sm:$0xff] }
 0x356   : > { %v2447_v50 = vpop.eup %2446  ;;  %v1149_v51 = vpop.xlane.xlu1 %1148 }
 0x357   : > { %v1202_v52 = vmul.f32 %v2447_v50, %v1155_v49  ;;  %2448 = vrcp.f32 %v1149_v51  ;;  %vm1207_vm3 = vweird.f32 %v2447_v50  ;;  %v1182_v3 = vand.u32 2147483648, %v1149_v51 }
 0x358   : > { %vm1208_vm5 = vmor %vm1206_vm4, %vm1207_vm3  ;;  %vm1176_vm8 = vweird.f32 %v1149_v51  ;;  %v1180_v6 = vand.u32 2147483647, %v1149_v51 }
 0x359   : > { %v1203_v53 = vsub.f32 1.0, %v1202_v52  ;;  %v1183_v15 = vor.u32 1.1754944e-38, %v1182_v3 }
 0x35a   : > { %vm1181_vm10 = vcmp.eq.f32.partialorder %v1180_v6, 8.507059e+37 }
 0x35b   : > { %v1204_v54 = vmul.f32 %v2447_v50, %v1203_v53 }
 0x35d   : > { %v2449_v55 = vpop.eup %2448  ;;  %v1205_v58 = vadd.f32 %v2447_v50, %v1204_v54  ;;  %v2425_v54 = vld [vmem:[%s3493_s0] ss:$0 sm:$0xff]  ;;  %s957_s0 = scalar_lea.vmem %s3494_s29, %s2274_s12  ;;  %s2030_s29 = scalar_lea.sflag [#allocation4], %s3100_s6 }
 0x35e   : > { %v1172_v56 = vmul.f32 %v2449_v55, %v1149_v51  ;;  %v1152_v57 = vpop.xlane.xlu2 %1151  ;;  %vm1177_vm6 = vweird.f32 %v2449_v55  ;;  %v965_v3 = vld [vmem:[%s957_s0 + $0x8] sm:$0xff] }
 0x35f   : > { %2450 = vrcp.f32 %v1152_v57  ;;  %v1209_v63 = vsel %vm1208_vm5, %v2447_v50, %v1205_v58  ;;  %vm3189_vm9 = vmor %vm1176_vm8, %vm1177_vm6  ;;  %v1197_v16 = vand.u32 2147483648, %v1152_v57  ;;  %v1195_v19 = vand.u32 2147483647, %v1152_v57 }
 0x360   : > { %v1173_v60 = vsub.f32 1.0, %v1172_v56  ;;  %v1214_v5 = vsel %vm1211_vm7, %v1213_v0, %v1209_v63  ;;  %vm1191_vm12 = vweird.f32 %v1152_v57  ;;  %vm1333_vm5 = vcmask 130048   ;;  %v1439_v63 = vld [vmem:[#allocation10] sm:$0xff]  ;;  %v964_v0 = vld [vmem:[%s957_s0] sm:$0xff] }
 0x361   : > { %v1215_v17 = vmul.f32 %v3171_v34, %v1214_v5  ;;  %v1198_v23 = vor.u32 1.1754944e-38, %v1197_v16  ;;  %vm1196_vm14 = vcmp.eq.f32.partialorder %v1195_v19, 8.507059e+37  ;;  %vm1335_vm6 = vcmask 195584   ;;  %v1408_v16 = vld [vmem:[#allocation8] sm:$0xff] }
 0x362   : > { %v1174_v62 = vmul.f32 %v2449_v55, %v1173_v60  ;;  %v1442_v60 = vld [vmem:[#allocation10 + $0x18] sm:$0xff] }
 0x364   : > { %v1175_v1 = vadd.f32 %v2449_v55, %v1174_v62  ;;  %v1440_v62 = vld [vmem:[#allocation10 + $0x8] sm:$0xff] }
 0x365   : > { %v2451_v2 = vpop.eup %2450 }
 0x366   : > { %v1187_v7 = vmul.f32 %v2451_v2, %v1152_v57  ;;  %v1146_v8 = vpop.xlane.xlu0 %1145  ;;  %v2406_v9 = vpop.permute.xlu2 %2405  ;;  %v1179_v11 = vsel %vm3189_vm9, %v2449_v55, %v1175_v1  ;;  %vm1192_vm11 = vweird.f32 %v2451_v2 }
 0x367   : > { %2452 = vrcp.f32 %v1146_v8  ;;  %v2408_v13 = vunpack.i.h.bf16 %v2406_v9  ;;  %v2407_v14 = vunpack.i.l.bf16 %v2406_v9  ;;  %v1184_v20 = vsel %vm1181_vm10, %v1183_v15, %v1179_v11  ;;  %vm1193_vm13 = vmor %vm1191_vm12, %vm1192_vm11  ;;  %v1409_v15 = vld [vmem:[#allocation8 + $0x8] sm:$0xff] }
 0x368   : > { %v1188_v12 = vsub.f32 1.0, %v1187_v7  ;;  %v1185_v26 = vmul.f32 %v3175_v38, %v1184_v20  ;;  %v1167_v31 = vand.u32 2147483648, %v1146_v8  ;;  %v1165_v33 = vand.u32 2147483647, %v1146_v8 }
 0x369   : > { %1289 = vmatpush.msrb.mxu0 %v2407_v14  ;;  %1315 = vmatpush.msra.mxu1 %v2408_v13  ;;  %vm1161_vm2 = vweird.f32 %v1146_v8  ;;  %2454 = vrcp.f32 %v2819_v59  ;;  %v1411_v13 = vld [vmem:[#allocation8 + $0x18] sm:$0xff]  ;;  %v1410_v14 = vld [vmem:[#allocation8 + $0x10] sm:$0xff] }
 0x36a   : > { %v1189_v18 = vmul.f32 %v2451_v2, %v1188_v12  ;;  %2244 = vmatmul.msk.f32.vlgmr.msra.gmra.mxu1 %vm1010_vm1, %v1215_v17  ;;  %v1168_v35 = vor.u32 1.1754944e-38, %v1167_v31  ;;  %vm1166_vm4 = vcmp.eq.f32.partialorder %v1165_v33, 8.507059e+37  ;;  %v2428_v17 = vld [vmem:[%s3434_s13] ss:$0 sm:$0xff] }
 0x36b   : > { %1465 = vmatpush.msra.mxu0 %v1442_v60  ;;  %v2426_v31 = vld [vmem:[%s3495_s5] ss:$0 sm:$0xff]  ;;  %s3498_s5 = sld [smem:[#allocation25_spill]] }
 0x36c   : > { %v1190_v21 = vadd.f32 %v2451_v2, %v1189_v18 }
 0x36d   : > { %v2453_v22 = vpop.eup %2452  ;;  %1466 = vmatpush.msra.mxu0 %v1441_v61 }
 0x36e   : > { %v1157_v24 = vmul.f32 %v2453_v22, %v1146_v8  ;;  %v1243_v25 = vpop.permute.xlu1 %1242  ;;  %v1194_v27 = vsel %vm1193_vm13, %v2451_v2, %v1190_v21  ;;  %vm1162_vm15 = vweird.f32 %v2453_v22 }
 0x36f   : > { %1263 = vmatpush.msra.mxu3 %v1243_v25  ;;  %v1199_v28 = vsel %vm1196_vm14, %v1198_v23, %v1194_v27  ;;  %vm1163_vm3 = vmor %vm1161_vm2, %vm1162_vm15  ;;  %1467 = vmatpush.msra.mxu0 %v1440_v62 }
 0x370   : > { %v1158_v29 = vsub.f32 1.0, %v1157_v24  ;;  %2242 = vmatmul.msk.f32.vlgmr.msra.gmra.mxu3 %vm1010_vm1, %v1185_v26  ;;  %v1200_v30 = vmul.f32 %v3179_v43, %v1199_v28  ;;  %v1340_v43 = vld [vmem:[#allocation7 + $0x18] sm:$0xff] }
 0x371   : > { %1468 = vmatpush.msra.mxu0 %v1439_v63  ;;  %1431 = vmatpush.msrb.mxu3 %v1411_v13  ;;  %s962_s14 = scalar_lea.vmem %s3498_s5, %s2274_s12  ;;  %v2430_v63 = vld [vmem:[%s3436_s15] ss:$0 sm:$0xff] }
 0x372   : > { %v1159_v32 = vmul.f32 %v2453_v22, %v1158_v29  ;;  %2243 = vmatmul.msk.f32.vlgmr.msrb.gmra.mxu0 %vm1010_vm1, %v1200_v30 }
 0x373   : > { %1432 = vmatpush.msrb.mxu3 %v1410_v14 }
 0x374   : > { %v1160_v34 = vadd.f32 %v2453_v22, %v1159_v32 }
 0x375   : > { %1433 = vmatpush.msrb.mxu3 %v1409_v15 }
 0x376   : > { %v1164_v36 = vsel %vm1163_vm3, %v2453_v22, %v1160_v34 }
 0x377   : > { %v1169_v37 = vsel %vm1166_vm4, %v1168_v35, %v1164_v36  ;;  %1434 = vmatpush.msrb.mxu3 %v1408_v16 }
 0x378   : > { %v1170_v38 = vmul.f32 %v3183_v46, %v1169_v37  ;;  %v1337_v46 = vld [vmem:[#allocation7] sm:$0xff] }
 0x379   : > { %v1217_v39 = vpop.permute.xlu0 %1216 }
 0x37a   : > { %1237 = vmatpush.msra.mxu2 %v1217_v39  ;;  %2247 = vmatmul.msk.f32.vlgmr.msra.gmra.mxu0 %vm976_vm0, %v964_v0  ;;  %v2429_v39 = vld [vmem:[%s3497_s11] ss:$0 sm:$0xff] }
 0x37b   : > { %2241 = vmatmul.msk.f32.vlgmr.msra.gmra.mxu2 %vm1010_vm1, %v1170_v38 }
 0x37c   : > { %1360 = vmatpush.msrb.mxu2 %v1340_v43 }
 0x37e   : > { %1361 = vmatpush.msrb.mxu2 %v1339_v44 }
 0x380   : > { %1362 = vmatpush.msrb.mxu2 %v1338_v45 }
 0x382   : > { %1363 = vmatpush.msrb.mxu2 %v1337_v46  ;;  %2248 = vmatmul.msk.f32.gmra.mxu0 %vm976_vm0, %v965_v3 }
 0x3e7   : > { %v1317_v42 = vpop.f32.mrf.mxu1 }
 0x3ef   : > { %v1291_v40 = vpop.f32.mrf.mxu0 }
 0x3f0   : > { %1325 = vrot.lane.b32.xlu2 %v1291_v40, %s2816_s2 }
 0x3f3   : > { %v1265_v41 = vpop.f32.mrf.mxu3 }
 0x3f4   : > { %1321 = vrot.lane.b32.xlu1 %v1265_v41, %s2817_s24 }
 0x3f7   : > { %v1470_v18 = vpop.f32.mrf.mxu0 }
 0x3f8   : > { %v1471_v19 = vadd.f32 %v2428_v17, %v1470_v18 }
 0x3fc   : > { %1329 = vrot.lane.b32.xlu1 %v1317_v42, %s3452_s25  ;;  %s3496_s25 = sld [smem:[#allocation32_spill]] }
 0x3fe   : > { %v1239_v48 = vpop.f32.mrf.mxu2 }
 0x3ff   : > { %v1473_v23 = vpop.f32.mrf.mxu0 }
 0x400   : > { %v1474_v24 = vadd.f32 %v2428_v17, %v1473_v23 }
 0x402   : > { %2251 = vmatpush.xpose.msk.msra.mxu2 %vm1010_vm1, %v1474_v24  ;;  %v2427_v34 = vld [vmem:[%s3496_s25] ss:$0 sm:$0xff] }
 0x404   : > { %1524 = vrot.lane.b32.xlu1 %v1474_v24, %s2813_s16 }
 0x406   : > { %2252 = vmatpush.xpose.msk.msra.mxu2 %vm1010_vm1, %v1471_v19 }
 0x40c   : > { %1522 = vrot.lane.b32.xlu1 %v1471_v19, %s2813_s16 }
 0x414   : > { %1528 = vrot.lane.b32.xlu1 %v1474_v24, %s2814_s4 }
 0x41c   : > { %1532 = vrot.lane.b32.xlu1 %v1474_v24, %s2812_s20 }
 0x44a   : > { %v1326_v50 = vpop.permute.xlu2 %1325 }
 0x466   : > { %v1322_v47 = vpop.permute.xlu1 %1321 }
 0x467   : > { %v1332_v49 = vsel %vm1010_vm1, %v1239_v48, %v1322_v47 }
 0x468   : > { %v1334_v52 = vsel %vm1333_vm5, %v1332_v49, %v1326_v50  ;;  %v1479_v49 = vld [vmem:[#allocation11 + $0x18] sm:$0xff]  ;;  %v1478_v50 = vld [vmem:[#allocation11 + $0x10] sm:$0xff] }
 0x469   : > { %1502 = vmatpush.msrb.mxu1 %v1479_v49 }
 0x46b   : > { %1503 = vmatpush.msrb.mxu1 %v1478_v50 }
 0x46e   : > { %v1330_v51 = vpop.permute.xlu1 %1329 }
 0x46f   : > { %v1336_v53 = vsel %vm1335_vm6, %v1334_v52, %v1330_v51  ;;  %v1477_v51 = vld [vmem:[#allocation11 + $0x8] sm:$0xff]  ;;  %v1476_v52 = vld [vmem:[#allocation11] sm:$0xff] }
 0x470   : > { %2245 = vmatmul.msk.f32.vlgmr.msrb.gmra.mxu2 %vm976_vm0, %v1336_v53  ;;  %1504 = vmatpush.msrb.mxu1 %v1477_v51  ;;  %v966_v53 = vld [vmem:[%s962_s14] sm:$0xff] }
 0x472   : > { %1505 = vmatpush.msrb.mxu1 %v1476_v52 }
 0x473   : > { %2249 = vmatmul.msk.f32.vlgmr.msrb.gmra.mxu1 %vm976_vm0, %v966_v53 }
 0x476   : > { %v1525_v37 = vpop.permute.xlu1 %1524 }
 0x477   : > { %2254 = vmatpush.xpose.msk.msra.mxu3 %vm1010_vm1, %v1525_v37 }
 0x47e   : > { %v1523_v38 = vpop.permute.xlu1 %1522 }
 0x47f   : > { %2255 = vmatpush.xpose.msk.msra.mxu3 %vm1010_vm1, %v1523_v38 }
 0x486   : > { %v1529_v42 = vpop.permute.xlu1 %1528 }
 0x487   : > { %2257 = vmatpush.xpose.msk.msrb.mxu2 %vm1010_vm1, %v1529_v42 }
 0x48e   : > { %v1533_v44 = vpop.permute.xlu1 %1532 }
 0x4f3   : > { %v1365_v55 = vpop.f32.mrf.mxu2 }
 0x4f4   : > { %v1366_v56 = vadd.f32 %v2425_v54, %v1365_v55  ;;  %v967_v54 = vld [vmem:[%s962_s14 + $0x8] sm:$0xff]  ;;  %s3508_s14 = sld [smem:[#allocation44_spill]] }
 0x4f5   : > { %2250 = vmatmul.msk.f32.gmra.mxu1 %vm976_vm0, %v967_v54 }
 0x4f6   : > { %v1368_v57 = vadd.f32 %v1366_v56, %v3138_v4  ;;  %v2455_v4 = vpop.eup %2454 }
 0x4f7   : > { %v1373_v1 = vmul.f32 32.0, %v2455_v4  ;;  %vm1377_vm7 = vweird.f32 %v2455_v4 }
 0x4f8   : > { %v1369_v58 = vsel %vm976_vm0, %v1368_v57, 0.0 }
 0x4f9   : > { %1370 = vadd.xlane.f32.xlu0 %v1369_v58  ;;  %v1374_v2 = vsub.f32 1.0, %v1373_v1 }
 0x4fa   : > { %s2738_s5 = scalar_lea.hbm %s3508_s14, 16 }
 0x4fb   : > { %v1375_v5 = vmul.f32 %v2455_v4, %v1374_v2 }
 0x4fd   : > { %v1376_v6 = vadd.f32 %v2455_v4, %v1375_v5 }
 0x4ff   : > { %v3227_v7 = vsel %vm1377_vm7, %v2455_v4, %v1376_v6  ;;  %v1507_v4 = vpop.f32.mrf.mxu1 }
 0x500   : > { %v1508_v1 = vadd.f32 %v2430_v63, %v1507_v4 }
 0x50d   : > { %1526 = vrot.lane.b32.xlu0 %v1471_v19, %s2814_s4 }
 0x56c   : > { %v1371_v8 = vpop.xlane.xlu0 %1370 }
 0x56d   : > { %v1379_v9 = vmul.f32 %v3227_v7, %v1371_v8 }
 0x56f   : > { %v1380_v10 = vsub.f32 %v1368_v57, %v1379_v9 }
 0x571   : > { %v1381_v11 = vmul.f32 %v1380_v10, %v1380_v10 }
 0x572   : > { %v1510_v0 = vpop.f32.mrf.mxu1 }
 0x573   : > { %v1382_v12 = vsel %vm976_vm0, %v1381_v11, 0.0  ;;  %v1511_v2 = vadd.f32 %v2430_v63, %v1510_v0 }
 0x574   : > { %1383 = vadd.xlane.f32.xlu2 %v1382_v12 }
 0x575   : > { %1771 = vmatpush.msrb.mxu0 %v1511_v2 }
 0x577   : > { %1772 = vmatpush.msrb.mxu0 %v1508_v1 }
 0x57f   : > { %v1527_v43 = vpop.permute.xlu0 %1526 }
 0x580   : > { %2258 = vmatpush.xpose.msk.msrb.mxu2 %vm1010_vm1, %v1527_v43 }
 0x58c   : > { %1530 = vrot.lane.b32.xlu2 %v1471_v19, %s2812_s20 }
 0x5e7   : > { %v1384_v20 = vpop.xlane.xlu2 %1383 }
 0x5e8   : > { %v1385_v21 = vmul.f32 %v1384_v20, %v3227_v7  ;;  %v2419_v20 = vpack.i.bf16 %v1508_v1, %v1511_v2 }
 0x5ea   : > { %v1386_v22 = vadd.f32 1e-05, %v1385_v21 }
 0x5ec   : > { %2456 = vrsqrt.f32 %v1386_v22  ;;  %vm1393_vm9 = vweird.f32 %v1386_v22 }
 0x5ef   : > { %v1531_v45 = vpop.permute.xlu2 %1530 }
 0x5f2   : > { %v2457_v25 = vpop.eup %2456 }
 0x5f3   : > { %v1388_v26 = vmul.f32 %v2457_v25, %v1386_v22  ;;  %vm1394_vm8 = vweird.f32 %v2457_v25 }
 0x5f4   : > { %vm1395_vm10 = vmor %vm1393_vm9, %vm1394_vm8 }
 0x5f5   : > { %v1389_v27 = vmul.f32 %v2457_v25, %v1388_v26 }
 0x5f7   : > { %v1390_v28 = vmul.f32 0.5, %v1389_v27 }
 0x5f9   : > { %v1391_v29 = vsub.f32 1.5, %v1390_v28 }
 0x5fb   : > { %v1392_v30 = vmul.f32 %v2457_v25, %v1391_v29 }
 0x5fd   : > { %v1396_v32 = vsel %vm1395_vm10, %v2457_v25, %v1392_v30 }
 0x5fe   : > { %v1397_v33 = vmul.f32 %v1396_v32, %v1380_v10 }
 0x600   : > { %v1402_v35 = vmul.f32 %v2426_v31, %v1397_v33 }
 0x602   : > { %v3248_v36 = vadd.f32 %v2427_v34, %v1402_v35 }
 0x604   : > { %2246 = vmatmul.msk.f32.vlgmr.msrb.gmra.mxu3 %vm976_vm0, %v3248_v36 }
 0x605   : > { %2260 = vmatpush.xpose.msk.msrb.mxu3 %vm1010_vm1, %v1533_v44 }
 0x609   : > { %2261 = vmatpush.xpose.msk.msrb.mxu3 %vm1010_vm1, %v1531_v45 }
 0x687   : > { %v1436_v40 = vpop.f32.mrf.mxu3 }
 0x688   : > { %v1437_v41 = vadd.f32 %v2429_v39, %v1436_v40 }
 0x68a   : > { %1514 = vrot.lane.b32.xlu1 %v1437_v41, %s2813_s16  ;;  %2253 = vmatmul.msk.f32.vlgmr.msra.gmra.mxu2 %vm1010_vm1, %v1437_v41 }
 0x692   : > { %1516 = vrot.lane.b32.xlu1 %v1437_v41, %s2814_s4 }
 0x69a   : > { %1518 = vrot.lane.b32.xlu1 %v1437_v41, %s2812_s20 }
 0x6fc   : > { %v1515_v46 = vpop.permute.xlu1 %1514 }
 0x6fd   : > { %2256 = vmatmul.msk.f32.vlgmr.msra.gmra.mxu3 %vm1010_vm1, %v1515_v46 }
 0x704   : > { %v1517_v47 = vpop.permute.xlu1 %1516 }
 0x705   : > { %2259 = vmatmul.msk.f32.vlgmr.msrb.gmra.mxu2 %vm1010_vm1, %v1517_v47 }
 0x70c   : > { %v1519_v48 = vpop.permute.xlu1 %1518 }
 0x70d   : > { %2262 = vmatmul.msk.f32.vlgmr.msrb.gmra.mxu3 %vm1010_vm1, %v1519_v48  ;;  %v1577_v55 = vpop.f32.mrf.mxu2  ;;  %v1928_v48 = vld [vmem:[#allocation14 + $0x18] sm:$0xff] }
 0x70e   : > { %v1658_v62 = vsel %vm1333_vm5, %v1577_v55, -inf }
 0x780   : > { %v1603_v56 = vpop.f32.mrf.mxu3 }
 0x781   : > { %v1661_v57 = vsel %vm1333_vm5, %v1603_v56, -inf }
 0x782   : > { %1662 = vmax.xlane.f32.xlu2 %v1661_v57 }
 0x788   : > { %v1629_v58 = vpop.f32.mrf.mxu2 }
 0x789   : > { %v1664_v59 = vsel %vm1333_vm5, %v1629_v58, -inf }
 0x78a   : > { %1665 = vmax.xlane.f32.xlu1 %v1664_v59 }
 0x790   : > { %v1655_v60 = vpop.f32.mrf.mxu3 }
 0x791   : > { %v1667_v61 = vsel %vm1333_vm5, %v1655_v60, -inf }
 0x792   : > { %1668 = vmax.xlane.f32.xlu0 %v1667_v61  ;;  %1659 = vmax.xlane.f32.xlu1 %v1658_v62 }
 0x7f5   : > { %v1663_v3 = vpop.xlane.xlu2 %1662 }
 0x7f6   : > { %v1671_v5 = vsub.f32 %v1603_v56, %v1663_v3 }
 0x7f8   : > { %v1676_v6 = vmul.f32 1.442695, %v1671_v5 }
 0x7fa   : > { %2458 = vpow2.f32 %v1676_v6 }
 0x7fd   : > { %v1666_v8 = vpop.xlane.xlu1 %1665 }
 0x7fe   : > { %v1672_v9 = vsub.f32 %v1629_v58, %v1666_v8 }
 0x800   : > { %v3283_v10 = vpop.eup %2458  ;;  %v1678_v11 = vmul.f32 1.442695, %v1672_v9 }
 0x801   : > { %v1685_v12 = vsel %vm1333_vm5, %v3283_v10, 0.0 }
 0x802   : > { %2460 = vpow2.f32 %v1678_v11  ;;  %1686 = vadd.xlane.f32.xlu1 %v1685_v12 }
 0x805   : > { %v1669_v13 = vpop.xlane.xlu0 %1668  ;;  %v1660_v21 = vpop.xlane.xlu1 %1659 }
 0x806   : > { %v1673_v14 = vsub.f32 %v1655_v60, %v1669_v13  ;;  %v1670_v22 = vsub.f32 %v1577_v55, %v1660_v21 }
 0x808   : > { %v3287_v15 = vpop.eup %2460  ;;  %v1680_v16 = vmul.f32 1.442695, %v1673_v14  ;;  %v1674_v23 = vmul.f32 1.442695, %v1670_v22 }
 0x809   : > { %v1688_v17 = vsel %vm1333_vm5, %v3287_v15, 0.0 }
 0x80a   : > { %2462 = vpow2.f32 %v1680_v16  ;;  %1689 = vadd.xlane.f32.xlu0 %v1688_v17 }
 0x80b   : > { %2464 = vpow2.f32 %v1674_v23 }
 0x810   : > { %v3291_v18 = vpop.eup %2462 }
 0x811   : > { %v1691_v19 = vsel %vm1333_vm5, %v3291_v18, 0.0  ;;  %v3298_v24 = vpop.eup %2464 }
 0x812   : > { %1692 = vadd.xlane.f32.xlu2 %v1691_v19  ;;  %v1682_v25 = vsel %vm1333_vm5, %v3298_v24, 0.0 }
 0x81b   : > { %2420 = vrot.lane.b32.xlu1 %v2419_v20, %s2813_s16  ;;  %s3509_s16 = sld [smem:[#allocation43_spill]] }
 0x81e   : > { %2410 = vrot.lane.b32.xlu0 %v2419_v20, %s2814_s4 }
 0x82a   : > { %2415 = vrot.lane.b32.xlu2 %v2419_v20, %s2812_s20  ;;  %s3503_s20 = smov 24  }
 0x848   : > { %1683 = vadd.xlane.f32.xlu0 %v1682_v25 }
 0x875   : > { %v1687_v26 = vpop.xlane.xlu1 %1686 }
 0x876   : > { %2466 = vrcp.f32 %v1687_v26  ;;  %v1720_v38 = vand.u32 2147483648, %v1687_v26  ;;  %vm1714_vm12 = vweird.f32 %v1687_v26  ;;  %v1718_v40 = vand.u32 2147483647, %v1687_v26 }
 0x878   : > { %v1721_v47 = vor.u32 1.1754944e-38, %v1720_v38  ;;  %vm1719_vm3 = vcmp.eq.f32.partialorder %v1718_v40, 8.507059e+37  ;;  %v2431_v38 = vld [vmem:[%s3438_s17] ss:$0 sm:$0xff] }
 0x87c   : > { %v2467_v27 = vpop.eup %2466 }
 0x87d   : > { %v1710_v28 = vmul.f32 %v2467_v27, %v1687_v26  ;;  %v1690_v29 = vpop.xlane.xlu0 %1689  ;;  %vm1715_vm11 = vweird.f32 %v2467_v27 }
 0x87e   : > { %2468 = vrcp.f32 %v1690_v29  ;;  %v1733_v41 = vand.u32 2147483647, %v1690_v29  ;;  %vm3302_vm14 = vmor %vm1714_vm12, %vm1715_vm11  ;;  %v1735_v44 = vand.u32 2147483648, %v1690_v29  ;;  %vm1729_vm15 = vweird.f32 %v1690_v29 }
 0x87f   : > { %v1711_v30 = vsub.f32 1.0, %v1710_v28  ;;  %v1863_v28 = vld [vmem:[#allocation13 + $0x10] sm:$0xff] }
 0x880   : > { %vm1734_vm4 = vcmp.eq.f32.partialorder %v1733_v41, 8.507059e+37  ;;  %v1736_v55 = vor.u32 1.1754944e-38, %v1735_v44 }
 0x881   : > { %v1712_v32 = vmul.f32 %v2467_v27, %v1711_v30  ;;  %v1861_v30 = vld [vmem:[#allocation13] sm:$0xff] }
 0x883   : > { %v1713_v37 = vadd.f32 %v2467_v27, %v1712_v32 }
 0x884   : > { %v2469_v31 = vpop.eup %2468 }
 0x885   : > { %v1725_v33 = vmul.f32 %v2469_v31, %v1690_v29  ;;  %v1693_v34 = vpop.xlane.xlu2 %1692  ;;  %vm1730_vm13 = vweird.f32 %v2469_v31  ;;  %v1717_v46 = vsel %vm3302_vm14, %v2467_v27, %v1713_v37  ;;  %v1864_v27 = vld [vmem:[#allocation13 + $0x18] sm:$0xff]  ;;  %v1862_v29 = vld [vmem:[#allocation13 + $0x8] sm:$0xff] }
 0x886   : > { %2470 = vrcp.f32 %v1693_v34  ;;  %vm3308_vm2 = vmor %vm1729_vm15, %vm1730_vm13  ;;  %v1722_v54 = vsel %vm1719_vm3, %v1721_v47, %v1717_v46  ;;  %v1748_v58 = vand.u32 2147483647, %v1693_v34  ;;  %v1750_v59 = vand.u32 2147483648, %v1693_v34  ;;  %1884 = vmatpush.msra.mxu0 %v1864_v27 }
 0x887   : > { %v1726_v35 = vsub.f32 1.0, %v1725_v33  ;;  %v1723_v1 = vmul.f32 %v3283_v10, %v1722_v54  ;;  %vm1744_vm8 = vweird.f32 %v1693_v34 }
 0x888   : > { %v1751_v5 = vor.u32 1.1754944e-38, %v1750_v59  ;;  %vm1749_vm10 = vcmp.eq.f32.partialorder %v1748_v58, 8.507059e+37  ;;  %1885 = vmatpush.msra.mxu0 %v1863_v28  ;;  %v1962_v58 = vld [vmem:[%s3443_s22 + $0x18] sm:$0xff] }
 0x889   : > { %v1727_v39 = vmul.f32 %v2469_v31, %v1726_v35 }
 0x88a   : > { %1886 = vmatpush.msra.mxu0 %v1862_v29 }
 0x88b   : > { %v1728_v43 = vadd.f32 %v2469_v31, %v1727_v39 }
 0x88c   : > { %v2471_v45 = vpop.eup %2470  ;;  %1887 = vmatpush.msra.mxu0 %v1861_v30 }
 0x88d   : > { %v1740_v49 = vmul.f32 %v2471_v45, %v1693_v34  ;;  %v2416_v50 = vpop.permute.xlu2 %2415  ;;  %v2421_v51 = vpop.permute.xlu1 %2420  ;;  %v1732_v52 = vsel %vm3308_vm2, %v2469_v31, %v1728_v43  ;;  %vm1745_vm7 = vweird.f32 %v2471_v45  ;;  %vm1971_vm2 = vcmask 523264  }
 0x88e   : > { %v2417_v53 = vunpack.i.l.bf16 %v2416_v50  ;;  %v2422_v57 = vunpack.i.l.bf16 %v2421_v51  ;;  %v2418_v60 = vunpack.i.h.bf16 %v2416_v50  ;;  %v1737_v62 = vsel %vm1734_vm4, %v1736_v55, %v1732_v52  ;;  %vm1746_vm9 = vmor %vm1744_vm8, %vm1745_vm7  ;;  %v1926_v50 = vld [vmem:[#allocation14 + $0x8] sm:$0xff]  ;;  %v1965_v52 = vld [vmem:[%s3443_s22 + $0x30] sm:$0xff] }
 0x88f   : > { %v1741_v56 = vsub.f32 1.0, %v1740_v49  ;;  %v2423_v63 = vunpack.i.h.bf16 %v2421_v51  ;;  %v1738_v6 = vmul.f32 %v3287_v15, %v1737_v62  ;;  %v1927_v49 = vld [vmem:[#allocation14 + $0x10] sm:$0xff]  ;;  %v1925_v51 = vld [vmem:[#allocation14] sm:$0xff] }
 0x890   : > { %1840 = vmatpush.msra.mxu3 %v2417_v53  ;;  %v2411_v61 = vpop.permute.xlu0 %2410  ;;  %1794 = vmatpush.msra.mxu1 %v2422_v57  ;;  %v1964_v53 = vld [vmem:[%s3443_s22 + $0x28] sm:$0xff] }
 0x891   : > { %v1742_v4 = vmul.f32 %v2471_v45, %v1741_v56  ;;  %v2412_v0 = vunpack.i.l.bf16 %v2411_v61  ;;  %v2413_v3 = vunpack.i.h.bf16 %v2411_v61  ;;  %v1963_v56 = vld [vmem:[%s3443_s22 + $0x20] sm:$0xff] }
 0x892   : > { %1841 = vmatpush.msra.mxu3 %v2418_v60  ;;  %1795 = vmatpush.msra.mxu1 %v2423_v63 }
 0x893   : > { %v1743_v2 = vadd.f32 %v2471_v45, %v1742_v4  ;;  %1817 = vmatpush.msra.mxu2 %v2412_v0  ;;  %2264 = vmatmul.msk.f32.vlgmr.msra.gmra.mxu1 %vm1333_vm5, %v1723_v1  ;;  %v2432_v0 = vld [vmem:[%s3439_s18] ss:$0 sm:$0xff] }
 0x894   : > { %1948 = vmatpush.msrb.mxu1 %v1928_v48 }
 0x895   : > { %v1747_v8 = vsel %vm1746_vm9, %v2471_v45, %v1743_v2  ;;  %1818 = vmatpush.msra.mxu2 %v2413_v3 }
 0x896   : > { %v1752_v9 = vsel %vm1749_vm10, %v1751_v5, %v1747_v8  ;;  %2265 = vmatmul.msk.f32.vlgmr.msra.gmra.mxu2 %vm1333_vm5, %v1738_v6  ;;  %1949 = vmatpush.msrb.mxu1 %v1927_v49  ;;  %v1961_v8 = vld [vmem:[%s3443_s22 + $0x10] sm:$0xff] }
 0x897   : > { %v1753_v10 = vmul.f32 %v3291_v18, %v1752_v9  ;;  %v1960_v9 = vld [vmem:[%s3443_s22 + $0x8] sm:$0xff] }
 0x898   : > { %1950 = vmatpush.msrb.mxu1 %v1926_v50 }
 0x899   : > { %2266 = vmatmul.msk.f32.vlgmr.msra.gmra.mxu3 %vm1333_vm5, %v1753_v10  ;;  %v1959_v10 = vld [vmem:[%s3443_s22] sm:$0xff] }
 0x89a   : > { %1951 = vmatpush.msrb.mxu1 %v1925_v51 }
 0x8bb   : > { %v1684_v11 = vpop.xlane.xlu0 %1683 }
 0x8bc   : > { %2472 = vrcp.f32 %v1684_v11  ;;  %v1705_v16 = vand.u32 2147483648, %v1684_v11  ;;  %v1703_v19 = vand.u32 2147483647, %v1684_v11  ;;  %vm1699_vm12 = vweird.f32 %v1684_v11 }
 0x8be   : > { %v1706_v20 = vor.u32 1.1754944e-38, %v1705_v16  ;;  %vm1704_vm14 = vcmp.eq.f32.partialorder %v1703_v19, 8.507059e+37 }
 0x8c2   : > { %v2473_v12 = vpop.eup %2472 }
 0x8c3   : > { %v1695_v13 = vmul.f32 %v2473_v12, %v1684_v11  ;;  %vm1700_vm11 = vweird.f32 %v2473_v12 }
 0x8c4   : > { %vm1701_vm13 = vmor %vm1699_vm12, %vm1700_vm11 }
 0x8c5   : > { %v1696_v14 = vsub.f32 1.0, %v1695_v13 }
 0x8c7   : > { %v1697_v17 = vmul.f32 %v2473_v12, %v1696_v14 }
 0x8c9   : > { %v1698_v15 = vadd.f32 %v2473_v12, %v1697_v17 }
 0x8cb   : > { %v1702_v21 = vsel %vm1701_vm13, %v2473_v12, %v1698_v15 }
 0x8cc   : > { %v1707_v22 = vsel %vm1704_vm14, %v1706_v20, %v1702_v21 }
 0x8cd   : > { %v1708_v18 = vmul.f32 %v3298_v24, %v1707_v22 }
 0x8cf   : > { %2263 = vmatmul.msk.f32.vlgmr.msrb.gmra.mxu0 %vm1333_vm5, %v1708_v18 }
 0x910   : > { %v1797_v23 = vpop.f32.mrf.mxu1 }
 0x911   : > { %1847 = vrot.lane.b32.xlu2 %v1797_v23, %s2817_s24  ;;  %s3504_s24 = sld [smem:[#allocation38_spill]] }
 0x917   : > { %v2433_v3 = vld [vmem:[%s3504_s24] ss:$0 sm:$0xff]  ;;  %s2271_s24 = sshll.u32 %s2979_s9, 3  ;;  %s3510_s9 = sshll.u32 %s3100_s6, 3 }
 0x918   : > { %s2040_s19 = scalar_lea.hbm %s3508_s14, %s2271_s24  ;;  %s952_s4 = scalar_lea.vmem [#allocation16], %s3510_s9 }
 0x919   : > { %v1820_v25 = vpop.f32.mrf.mxu2  ;;  %s2044_s11 = sshll.u32 %s2040_s19, 4  ;;  %s2045_s11 = int_to_ptr.hbm [resolvable:$true] %s2044_s11 }
 0x91a   : > { %1851 = vrot.lane.b32.xlu1 %v1820_v25, %s2816_s2  ;;  %s3506_s2 = sld [smem:[#allocation41_spill]]  ;;  %s2732_s0 = sshra.s32 %s2045_s11, 4  ;;  %s2733_s0 = int_to_ptr.hbm [resolvable:$true] %s2732_s0 }
 0x91b   : > { %s2734_s24 = scalar_lea.hbm %s2733_s0, 8  ;;  %p2739_p8 = scmp.lt.s32.totalorder %s2733_s0, %s3508_s14 }
 0x91c   : > { %v1843_v26 = vpop.f32.mrf.mxu3  ;;  %p2735_p3 = scmp.ne.s32.totalorder %s2733_s0, %s2734_s24  ;;  %p2740_p7 = scmp.lt.s32.totalorder %s2738_s5, %s2734_s24 }
 0x91d   : > { %1855 = vrot.lane.b32.xlu2 %v1843_v26, %s3503_s20  ;;  %s3505_s20 = sld [smem:[#allocation40_spill]] }
 0x91e   : > { %p2736_p4 = pnand %p2735_p3, %p3069_p13  ;;  %p2741_p9 = por %p2740_p7, %p2739_p8 }
 0x920   : > { %v2435_v17 = vld [vmem:[%s3506_s2] ss:$0 sm:$0xff]  ;;  %s2042_s2 = sshll.u32 %s952_s4, 4  ;;  %p2737_p12 = pneg %p2736_p4  ;;  %s2043_s2 = int_to_ptr.vmem [resolvable:$true] %s2042_s2 }
 0x922   : > { %p2742_p10 = pnand %p2741_p9, %p2737_p12 }
 0x923   : > { %v2434_v11 = vld [vmem:[%s3505_s20] ss:$0 sm:$0xff] }
 0x94c   : > { %v1774_v31 = vpop.f32.mrf.mxu0 }
 0x96b   : > { %v1848_v24 = vpop.permute.xlu2 %1847 }
 0x96c   : > { %v1858_v32 = vsel %vm1010_vm1, %v1774_v31, %v1848_v24 }
 0x977   : > { %v1856_v34 = vpop.permute.xlu2 %1855 }
 0x98c   : > { %v1852_v33 = vpop.permute.xlu1 %1851 }
 0x98d   : > { %v1859_v35 = vsel %vm1333_vm5, %v1858_v32, %v1852_v33 }
 0x98e   : > { %v1860_v37 = vsel %vm1335_vm6, %v1859_v35, %v1856_v34  ;;  %v2436_v35 = vld [vmem:[%s3507_s23] ss:$0 sm:$0xff] }
 0x98f   : > { %2267 = vmatmul.msk.f32.vlgmr.msra.gmra.mxu0 %vm976_vm0, %v1860_v37 }
 0xa0c   : > { %v1889_v39 = vpop.f32.mrf.mxu0 }
 0xa0d   : > { %v1890_v40 = vadd.f32 %v2431_v38, %v1889_v39  ;;  %v2437_v38 = vld [vmem:[%s3509_s16] ss:$0 sm:$0xff] }
 0xa0f   : > { %v1892_v41 = vadd.f32 %v1890_v40, %v3248_v36  ;;  %v1966_v36 = vld [vmem:[%s3443_s22 + $0x38] sm:$0xff] }
 0xa10   : > { %1983 = vmatpush.msrb.mxu2 %v1966_v36 }
 0xa11   : > { %v1893_v42 = vsel %vm976_vm0, %v1892_v41, 0.0 }
 0xa12   : > { %1894 = vadd.xlane.f32.xlu1 %v1893_v42  ;;  %1984 = vmatpush.msrb.mxu2 %v1965_v52 }
 0xa14   : > { %1985 = vmatpush.msrb.mxu2 %v1964_v53 }
 0xa16   : > { %1986 = vmatpush.msrb.mxu2 %v1963_v56 }
 0xa18   : > { %1987 = vmatpush.msrb.mxu2 %v1962_v58 }
 0xa1a   : > { %1988 = vmatpush.msrb.mxu2 %v1961_v8 }
 0xa1c   : > { %1989 = vmatpush.msrb.mxu2 %v1960_v9 }
 0xa1e   : > { %1990 = vmatpush.msrb.mxu2 %v1959_v10 }
 0xa85   : > { %v1895_v43 = vpop.xlane.xlu1 %1894 }
 0xa86   : > { %v1896_v44 = vmul.f32 %v1895_v43, %v3227_v7 }
 0xa88   : > { %v1897_v45 = vsub.f32 %v1892_v41, %v1896_v44 }
 0xa8a   : > { %v1898_v46 = vmul.f32 %v1897_v45, %v1897_v45 }
 0xa8c   : > { %v1899_v47 = vsel %vm976_vm0, %v1898_v46, 0.0 }
 0xa8d   : > { %1900 = vadd.xlane.f32.xlu2 %v1899_v47 }
 0xb00   : > { %v1901_v54 = vpop.xlane.xlu2 %1900 }
 0xb01   : > { %v1902_v55 = vmul.f32 %v1901_v54, %v3227_v7 }
 0xb03   : > { %v1903_v57 = vadd.f32 1e-05, %v1902_v55 }
 0xb05   : > { %2474 = vrsqrt.f32 %v1903_v57  ;;  %vm1910_vm5 = vweird.f32 %v1903_v57 }
 0xb0b   : > { %v2475_v59 = vpop.eup %2474 }
 0xb0c   : > { %v1905_v60 = vmul.f32 %v2475_v59, %v1903_v57  ;;  %vm1911_vm1 = vweird.f32 %v2475_v59 }
 0xb0d   : > { %vm1912_vm6 = vmor %vm1910_vm5, %vm1911_vm1 }
 0xb0e   : > { %v1906_v61 = vmul.f32 %v2475_v59, %v1905_v60 }
 0xb10   : > { %v1907_v62 = vmul.f32 0.5, %v1906_v61 }
 0xb12   : > { %v1908_v4 = vsub.f32 1.5, %v1907_v62 }
 0xb14   : > { %v1909_v63 = vmul.f32 %v2475_v59, %v1908_v4 }
 0xb16   : > { %v1913_v1 = vsel %vm1912_vm6, %v2475_v59, %v1909_v63 }
 0xb17   : > { %v1914_v2 = vmul.f32 %v1913_v1, %v1897_v45 }
 0xb19   : > { %v1919_v5 = vmul.f32 %v2432_v0, %v1914_v2 }
 0xb1b   : > { %v1924_v6 = vadd.f32 %v2433_v3, %v1919_v5 }
 0xb1d   : > { %2268 = vmatmul.msk.f32.vlgmr.msrb.gmra.mxu1 %vm976_vm0, %v1924_v6 }
 0xb9a   : > { %v1953_v12 = vpop.f32.mrf.mxu1 }
 0xb9b   : > { %v1954_v13 = vadd.f32 %v2434_v11, %v1953_v12 }
 0xb9d   : > { %vm1956_vm15 = vcmp.gt.f32.partialorder %v1954_v13, 0.0  ;;  %v1957_v14 = vmul.f32 0.05, %v1954_v13 }
 0xb9f   : > { %v1958_v16 = vsel %vm1956_vm15, %v1954_v13, %v1957_v14 }
 0xba0   : > { %2269 = vmatmul.msk.f32.vlgmr.msrb.gmra.mxu2 %vm1971_vm2, %v1958_v16 }
 0xc23   : > { %v1992_v19 = vpop.f32.mrf.mxu2 }
 0xc24   : > { %v1993_v15 = vadd.f32 %v2435_v17, %v1992_v19 }
 0xc26   : > { %v1995_v20 = vadd.f32 %v1993_v15, %v1924_v6 }
 0xc28   : > { %v1996_v21 = vsel %vm976_vm0, %v1995_v20, 0.0 }
 0xc29   : > { %1997 = vadd.xlane.f32.xlu0 %v1996_v21 }
 0xc9c   : > { %v1998_v22 = vpop.xlane.xlu0 %1997 }
 0xc9d   : > { %v1999_v18 = vmul.f32 %v1998_v22, %v3227_v7 }
 0xc9f   : > { %v2000_v23 = vsub.f32 %v1995_v20, %v1999_v18 }
 0xca1   : > { %v2001_v25 = vmul.f32 %v2000_v23, %v2000_v23 }
 0xca3   : > { %v2002_v26 = vsel %vm976_vm0, %v2001_v25, 0.0 }
 0xca4   : > { %2003 = vadd.xlane.f32.xlu0 %v2002_v26 }
 0xd17   : > { %v2004_v27 = vpop.xlane.xlu0 %2003 }
 0xd18   : > { %v2005_v28 = vmul.f32 %v2004_v27, %v3227_v7 }
 0xd1a   : > { %v2006_v29 = vadd.f32 1e-05, %v2005_v28 }
 0xd1c   : > { %2476 = vrsqrt.f32 %v2006_v29  ;;  %vm2013_vm4 = vweird.f32 %v2006_v29 }
 0xd22   : > { %v2477_v30 = vpop.eup %2476 }
 0xd23   : > { %v2008_v24 = vmul.f32 %v2477_v30, %v2006_v29  ;;  %vm2014_vm3 = vweird.f32 %v2477_v30 }
 0xd24   : > { %vm2015_vm7 = vmor %vm2013_vm4, %vm2014_vm3 }
 0xd25   : > { %v2009_v31 = vmul.f32 %v2477_v30, %v2008_v24 }
 0xd27   : > { %v2010_v32 = vmul.f32 0.5, %v2009_v31 }
 0xd29   : > { %v2011_v33 = vsub.f32 1.5, %v2010_v32 }
 0xd2b   : > { %v2012_v34 = vmul.f32 %v2477_v30, %v2011_v33 }
 0xd2d   : > { %v2016_v7 = vsel %vm2015_vm7, %v2477_v30, %v2012_v34 }
 0xd2e   : > { %v2017_v37 = vmul.f32 %v2016_v7, %v2000_v23 }
 0xd30   : > { %v2022_v39 = vmul.f32 %v2436_v35, %v2017_v37 }
 0xd32   : > { %v2027_v40 = vadd.f32 %v2437_v38, %v2022_v39 }
 0xd34   : > { %2028 = vst.msk [vmem:[%s952_s4] sm:$0xff] %vm976_vm0, %v2027_v40 }
 0xd35   : > { %2745 = shalt.err (!%p2742_p10)
}
 0xd36   : > { %2306 = dma.vmem_to_hbm [thread:$0]  (%p3069_p13), %s2043_s2, 128, %s2045_s11, %s2030_s29  }
 0xd37 PF: > { %s2056_s6 = sand.u32 1, %s2788_s27   ;;  %p3511_p11 = scmp.ge.s32.totalorder %s2800_s28, 2 }
 0xd38   : > { %s2057_s20 = scalar_lea.sflag [#allocation4], %s2056_s6 }
 0xd39   : > { %p2335_p0 = pnand %p3511_p11, %p3074_p5 }
 0xd3b   : > { %p2336_p2 = pneg %p2335_p0 }
 0xd3d   : > { %2783 = dma.done.wait (%p2336_p2), %s2057_s20, 128  }
 0xd3e   : > { %2785 = vsyncadd (%p2336_p2), %s2057_s20, 4294967168  ;;  %p43_p6 = scmp.ge.s32.totalorder %s3049_s21, 4   ;;  %s3512_s27 = smov %s2792_s3 }
 0xd3f   : > { %s3513_s3 = smov %s2796_s7  ;;  %s3514_s7 = smov %s3061_s8 }
 0xd40   : > { %s3515_s28 = smov %s3049_s21  ;;  %45 = sbr.rel (!%p43_p6) target bundleno = 32 (0x20), region = 203 }
 0xd45   :  { %2063 = vsyncpa [#allocation3], 1 }
 0xd46   :  { %2065 = vsyncpa [#allocation3 + $0x1], 1 }
 0xd47   :  { %2066 = vsyncpa [#allocation6], 1 }
 0xd48   :  { %2067 = vsyncpa [#allocation9], 1 }
 0xd49   :  { %2068 = vsyncpa [#allocation12], 1 }
 0xd4a   :  { %2069 = vsyncpa [#allocation15], 1 }
 0xd4b   :  { %2070 = vsyncpa [#allocation4], 1 }
 0xd4c   :  { %2072 = vsyncpa [#allocation4 + $0x1], 1 }

</bundles_post_ra>
